<compile_context>
chip_gen: v5e
topology: v5e:2x2
jax: 0.10.0
libtpu: 0.0.40
codegen_flags: <defaults>
</compile_context>

<pallas_src>
import math
from functools import partial

import jax
import jax.numpy as jnp
from jax.experimental import pallas as pl
from jax.experimental.pallas import tpu as pltpu


# Dtype fed to the MXU inside the matmul kernels. float32 preserves the
# PyTorch fp32 numerics; flip to jnp.bfloat16 on v5e/v6e for ~2x MXU
# throughput / half the weight traffic (accumulation stays f32 via
# preferred_element_type; all elementwise math stays f32 either way).
MATMUL_INPUT_DTYPE = jnp.float32


# -------------------- tile helpers --------------------

def _pick_tile(dim, target, align):
    """Largest tile <= target that is a multiple of `align` and divides `dim`.
    Falls back to the full dimension (block == array dim is always legal).
    Targets are sized so 2x double-buffered inputs + output + accumulator stay
    well inside the scoped-VMEM default on v5e (16 MiB) and v7x (32 MiB)."""
    if dim <= target:
        return dim
    t = (target // align) * align
    while t >= align:
        if dim % t == 0:
            return t
        t -= align
    return dim


# -------------------- fused activation helpers --------------------

def _erf_approx(x):
    # Abramowitz & Stegun 7.1.26 rational approximation of erf
    # (|abs err| < 1.5e-7 ~ f32 eps) -> matches exact-erf GELU at f32 precision
    # while using only ops that lower cleanly in Mosaic (exp / mul / where).
    a1, a2, a3, a4, a5 = (0.254829592, -0.284496736, 1.421413741,
                          -1.453152027, 1.061405429)
    pc = 0.3275911
    sign = jnp.where(x >= 0.0, 1.0, -1.0)
    z = jnp.abs(x)
    t = 1.0 / (1.0 + pc * z)
    poly = ((((a5 * t + a4) * t + a3) * t + a2) * t + a1) * t
    return sign * (1.0 - poly * jnp.exp(-z * z))


def _gelu_erf(x):
    # exact (erf-based) BERT GELU, evaluated in f32
    return 0.5 * x * (1.0 + _erf_approx(x * 0.7071067811865476))


# -------------------- tiled linear (+ optional fused GELU epilogue) --------------------

def _linear_kernel(x_ref, w_ref, b_ref, o_ref, acc_ref, *, activation):
    @pl.when(pl.program_id(2) == 0)
    def _():
        acc_ref[...] = jnp.zeros_like(acc_ref)

    acc_ref[...] += jnp.dot(
        x_ref[...].astype(MATMUL_INPUT_DTYPE),
        w_ref[...].astype(MATMUL_INPUT_DTYPE),
        preferred_element_type=jnp.float32)

    @pl.when(pl.program_id(2) == pl.num_programs(2) - 1)
    def _():
        y = acc_ref[...] + b_ref[...].astype(jnp.float32)
        if activation == "gelu":
            y = _gelu_erf(y)
        o_ref[...] = y.astype(o_ref.dtype)


def linear(x, w, b, activation=None, *, tm=256, tn=512, tk=512):
    """x:(M,K) @ w:(K,N) + b:(N,) -> (M,N), tiled and double-buffer pipelined,
    f32 accumulator scratch, optional fused GELU epilogue."""
    M, K = x.shape
    N = w.shape[1]
    bm = _pick_tile(M, tm, 8)
    bn = _pick_tile(N, tn, 128)
    bk = _pick_tile(K, tk, 128)
    return pl.pallas_call(
        partial(_linear_kernel, activation=activation),
        out_shape=jax.ShapeDtypeStruct((M, N), x.dtype),
        grid=(M // bm, N // bn, K // bk),
        in_specs=[
            pl.BlockSpec((bm, bk), lambda i, j, k: (i, k)),
            pl.BlockSpec((bk, bn), lambda i, j, k: (k, j)),
            pl.BlockSpec((1, bn), lambda i, j, k: (0, j)),
        ],
        out_specs=pl.BlockSpec((bm, bn), lambda i, j, k: (i, j)),
        scratch_shapes=[pltpu.VMEM((bm, bn), jnp.float32)],
        compiler_params=pltpu.CompilerParams(
            dimension_semantics=("parallel", "parallel", "arbitrary")),
    )(x, w, b.reshape(1, N))


# -------------------- LayerNorm / fused residual-add + LayerNorm --------------------

def _ln_kernel(x_ref, g_ref, b_ref, o_ref, *, eps):
    x = x_ref[...].astype(jnp.float32)
    mu = jnp.mean(x, axis=-1, keepdims=True)
    var = jnp.mean((x - mu) ** 2, axis=-1, keepdims=True)
    y = (x - mu) * jax.lax.rsqrt(var + eps)
    o_ref[...] = (y * g_ref[...] + b_ref[...]).astype(o_ref.dtype)


def _add_ln_kernel(x_ref, r_ref, g_ref, b_ref, o_ref, *, eps):
    x = x_ref[...].astype(jnp.float32) + r_ref[...].astype(jnp.float32)
    mu = jnp.mean(x, axis=-1, keepdims=True)
    var = jnp.mean((x - mu) ** 2, axis=-1, keepdims=True)
    y = (x - mu) * jax.lax.rsqrt(var + eps)
    o_ref[...] = (y * g_ref[...] + b_ref[...]).astype(o_ref.dtype)


def layernorm(x, gamma, beta, eps=1e-12, tm=256):
    M, H = x.shape
    bm = _pick_tile(M, tm, 8)
    row = pl.BlockSpec((bm, H), lambda i: (i, 0))
    vec = pl.BlockSpec((1, H), lambda i: (0, 0))
    return pl.pallas_call(
        partial(_ln_kernel, eps=eps),
        out_shape=jax.ShapeDtypeStruct((M, H), x.dtype),
        grid=(M // bm,),
        in_specs=[row, vec, vec],
        out_specs=row,
        compiler_params=pltpu.CompilerParams(dimension_semantics=("parallel",)),
    )(x, gamma.reshape(1, H), beta.reshape(1, H))


def add_layernorm(x, res, gamma, beta, eps=1e-12, tm=256):
    """LayerNorm(x + res): the residual add is fused into the LN kernel so the
    sum never round-trips through HBM."""
    M, H = x.shape
    bm = _pick_tile(M, tm, 8)
    row = pl.BlockSpec((bm, H), lambda i: (i, 0))
    vec = pl.BlockSpec((1, H), lambda i: (0, 0))
    return pl.pallas_call(
        partial(_add_ln_kernel, eps=eps),
        out_shape=jax.ShapeDtypeStruct((M, H), x.dtype),
        grid=(M // bm,),
        in_specs=[row, row, vec, vec],
        out_specs=row,
        compiler_params=pltpu.CompilerParams(dimension_semantics=("parallel",)),
    )(x, res, gamma.reshape(1, H), beta.reshape(1, H))


# -------------------- BERT multi-head self-attention (fused QKV in, lane-dense) --------------------

def _mhsa_kernel(qkv_ref, bias_ref, o_ref, *, n_heads, scale):
    x = qkv_ref[0]        # (S, 3H) lane-dense fused Q|K|V
    bias = bias_ref[0]    # (1, S) additive key mask
    H = x.shape[-1] // 3
    dh = H // n_heads
    q = x[:, :H]
    k = x[:, H:2 * H]
    v = x[:, 2 * H:]
    outs = []
    for h in range(n_heads):   # static unroll; per-head 2-D MXU matmuls
        sl = slice(h * dh, (h + 1) * dh)
        # fold the 1/sqrt(dh) scale into q (S x dh) -- cheaper than scaling SxS
        qh = q[:, sl].astype(jnp.float32) * scale
        kh = k[:, sl].astype(jnp.float32)
        vh = v[:, sl].astype(jnp.float32)
        s = jax.lax.dot_general(qh, kh, (((1,), (1,)), ((), ())),
                                preferred_element_type=jnp.float32)  # (S, S)
        s = s + bias
        m = jnp.max(s, axis=-1, keepdims=True)
        e = jnp.exp(s - m)
        p = e * pl.reciprocal(jnp.sum(e, axis=-1, keepdims=True), approx=True)
        outs.append(jnp.dot(p, vh, preferred_element_type=jnp.float32))
    # single lane-dense (S, H) store
    o_ref[0] = jnp.concatenate(outs, axis=-1).astype(o_ref.dtype)


def mhsa(qkv, mask_bias, n_heads):
    """Scaled dot-product attention on the fused projection.
    qkv:(B,S,3H) (Q|K|V concatenated on the lane axis); mask_bias:(B,S) additive.
    One batch element (all heads) per grid step; batch axis is 'parallel'.
    Slicing Q/K/V inside the kernel avoids three (B,S,H) HBM slice copies."""
    B, S, H3 = qkv.shape
    H = H3 // 3
    return pl.pallas_call(
        partial(_mhsa_kernel, n_heads=n_heads,
                scale=1.0 / math.sqrt(H // n_heads)),
        out_shape=jax.ShapeDtypeStruct((B, S, H), qkv.dtype),
        grid=(B,),
        in_specs=[pl.BlockSpec((1, S, H3), lambda b: (b, 0, 0)),
                  pl.BlockSpec((1, 1, S), lambda b: (b, 0, 0))],
        out_specs=pl.BlockSpec((1, S, H), lambda b: (b, 0, 0)),
        compiler_params=pltpu.CompilerParams(dimension_semantics=("parallel",)),
    )(qkv, mask_bias.reshape(B, 1, S))


# -------------------- IAN bi-linear attention --------------------

def _ian_attend_kernel(kx_ref, qw_ref, o_ref):
    kx = kx_ref[0].astype(jnp.float32)    # (T, H) pre-projected keys
    qw = qw_ref[0].astype(jnp.float32)    # (1, H) pooled query after Wq and W_bl
    score = jax.lax.dot_general(qw, kx, (((1,), (1,)), ((), ())),
                                preferred_element_type=jnp.float32)   # (1, T)
    m = jnp.max(score, axis=-1, keepdims=True)
    e = jnp.exp(score - m)
    p = e * pl.reciprocal(jnp.sum(e, axis=-1, keepdims=True), approx=True)
    o_ref[0] = jnp.dot(p, kx, preferred_element_type=jnp.float32).astype(o_ref.dtype)


def ian_attention(k_seq, pooled_q, p):
    """Attention(score_function='bi_linear', n_head=1):
      kx = k Wk + bk ; qw = (pool Wq + bq) Wbl ; score = softmax(qw kx^T) ;
      out = proj(score @ kx).
    The key projection (B*T, H) x (H, H), the pooled-query transforms and the
    output projection are batched tiled linears (weights streamed once); only
    the per-batch score/softmax/weighted-sum runs per grid step."""
    B, T, H = k_seq.shape
    kx = linear(k_seq.reshape(B * T, H), p["w_k"], p["b_k"]).reshape(B, T, H)
    qx = linear(pooled_q, p["w_q"], p["b_q"])                       # (B, H)
    qw = linear(qx, p["w_bl"], jnp.zeros((H,), pooled_q.dtype))     # (B, H), W_bl has no bias
    att = pl.pallas_call(
        _ian_attend_kernel,
        out_shape=jax.ShapeDtypeStruct((B, 1, H), k_seq.dtype),
        grid=(B,),
        in_specs=[
            pl.BlockSpec((1, T, H), lambda b: (b, 0, 0)),
            pl.BlockSpec((1, 1, H), lambda b: (b, 0, 0)),
        ],
        out_specs=pl.BlockSpec((1, 1, H), lambda b: (b, 0, 0)),
        compiler_params=pltpu.CompilerParams(dimension_semantics=("parallel",)),
    )(kx, qw.reshape(B, 1, H))
    return linear(att.reshape(B, H), p["w_proj"], p["b_proj"])      # (B, H)


# -------------------- BERT encoder (weights shared between the two passes) --------------------

def bert_embeddings(input_ids, token_type_ids, p):
    B, S = input_ids.shape
    H = p["word_emb"].shape[1]
    pos_ids = jnp.arange(S)
    e = (p["word_emb"][input_ids]
         + p["pos_emb"][pos_ids][None, :, :]
         + p["type_emb"][token_type_ids])
    e = layernorm(e.reshape(B * S, H), p["ln_g"], p["ln_b"])
    return e.reshape(B, S, H)


def bert_layer(x, mask_bias, p, n_heads):
    B, S, H = x.shape
    x2 = x.reshape(B * S, H)

    # fused Q/K/V projection: one (H, 3H) matmul instead of three (H, H);
    # the fused (B, S, 3H) tensor goes straight into the attention kernel.
    qkv = linear(x2, p["qkv_w"], p["qkv_b"]).reshape(B, S, 3 * H)

    ctx = mhsa(qkv, mask_bias, n_heads)                              # (B, S, H)
    attn_out = linear(ctx.reshape(B * S, H), p["ao_w"], p["ao_b"])
    h1 = add_layernorm(attn_out, x2, p["ln1_g"], p["ln1_b"])         # fused add + LN
    inter = linear(h1, p["i_w"], p["i_b"], activation="gelu")        # fused GELU epilogue
    ffn = linear(inter, p["o_w"], p["o_b"])
    h2 = add_layernorm(ffn, h1, p["ln2_g"], p["ln2_b"])              # fused add + LN
    return h2.reshape(B, S, H)


def bert_encode(input_ids, token_type_ids, attention_mask, p, n_heads):
    x = bert_embeddings(input_ids, token_type_ids, p)
    mask_bias = (1.0 - attention_mask.astype(jnp.float32)) * -10000.0
    for lp in p["layers"]:
        x = bert_layer(x, mask_bias, lp, n_heads)
    return x  # == all_encoder_layers[-1]


# -------------------- BERT_IAN forward --------------------

def bert_ian_forward(params, input_ids, token_type_ids, attention_mask,
                     input_t_ids, input_t_mask, segment_t_ids, *, n_heads):
    text_raw_len = jnp.sum(input_ids != 0, axis=-1).astype(jnp.float32)
    aspect_len = jnp.sum(input_t_ids != 0, axis=-1).astype(jnp.float32)

    context = bert_encode(input_ids, token_type_ids, attention_mask,
                          params["bert"], n_heads)                    # (B, S, H)
    aspect = bert_encode(input_t_ids, segment_t_ids, input_t_mask,
                         params["bert"], n_heads)                     # (B, T, H)

    # length-normalized pooling (torch.sum over seq / non-pad token count)
    context_pool = jnp.sum(context, axis=1) / text_raw_len[:, None]   # (B, H)
    aspect_pool = jnp.sum(aspect, axis=1) / aspect_len[:, None]       # (B, H)

    # attention_aspect(k=aspect, q=context_pool); attention_context(k=context, q=aspect_pool)
    aspect_final = ian_attention(aspect, context_pool, params["attn_aspect"])
    context_final = ian_attention(context, aspect_pool, params["attn_context"])

    x = jnp.concatenate([aspect_final, context_final], axis=-1)       # (B, 2H)
    logits = linear(x, params["dense_w"], params["dense_b"])          # (B, output_dim)
    return logits


# -------------------- deterministic parameter init --------------------

def init_params(key, vocab, H, n_layers, inter, max_pos, type_vocab, out_dim):
    keys = iter(jax.random.split(key, 256))
    nrm = lambda shape: jax.random.normal(next(keys), shape, jnp.float32) * 0.02

    def dense(i, o):
        return nrm((i, o)), jnp.zeros((o,), jnp.float32)

    bert = {
        "word_emb": nrm((vocab, H)),
        "pos_emb": nrm((max_pos, H)),
        "type_emb": nrm((type_vocab, H)),
        "ln_g": jnp.ones((H,), jnp.float32),
        "ln_b": jnp.zeros((H,), jnp.float32),
        "layers": [],
    }
    for _ in range(n_layers):
        lp = {}
        qw, qb = dense(H, H)
        kw, kb = dense(H, H)
        vw, vb = dense(H, H)
        # Q/K/V fused into a single (H, 3H) projection (mathematically identical).
        lp["qkv_w"] = jnp.concatenate([qw, kw, vw], axis=1)
        lp["qkv_b"] = jnp.concatenate([qb, kb, vb], axis=0)
        lp["ao_w"], lp["ao_b"] = dense(H, H)
        lp["ln1_g"], lp["ln1_b"] = jnp.ones((H,), jnp.float32), jnp.zeros((H,), jnp.float32)
        lp["i_w"], lp["i_b"] = dense(H, inter)
        lp["o_w"], lp["o_b"] = dense(inter, H)
        lp["ln2_g"], lp["ln2_b"] = jnp.ones((H,), jnp.float32), jnp.zeros((H,), jnp.float32)
        bert["layers"].append(lp)

    def ian():
        p = {}
        p["w_k"], p["b_k"] = dense(H, H)
        p["w_q"], p["b_q"] = dense(H, H)
        p["w_bl"] = nrm((H, H))
        p["w_proj"], p["b_proj"] = dense(H, H)
        return p

    dw, db = dense(2 * H, out_dim)
    return {"bert": bert, "attn_aspect": ian(), "attn_context": ian(),
            "dense_w": dw, "dense_b": db}


# -------------------- main --------------------

if __name__ == "__main__":
    B, S_CTX, S_ASP = 2, 8, 8
    VOCAB, H, N_LAYERS, N_HEADS, INTER = 30, 32, 2, 2, 64
    MAX_POS, TYPE_VOCAB, OUT_DIM = 16, 2, 3

    key = jax.random.PRNGKey(0)
    kp, kc, ka = jax.random.split(key, 3)
    params = init_params(kp, VOCAB, H, N_LAYERS, INTER, MAX_POS, TYPE_VOCAB, OUT_DIM)

    # deterministic padded inputs (0 == pad id, matching `input_ids != 0` length logic)
    ctx_lens = jnp.array([8, 5])
    asp_lens = jnp.array([3, 2])
    ctx_mask = (jnp.arange(S_CTX)[None, :] < ctx_lens[:, None]).astype(jnp.int32)
    asp_mask = (jnp.arange(S_ASP)[None, :] < asp_lens[:, None]).astype(jnp.int32)
    input_ids = jax.random.randint(kc, (B, S_CTX), 1, VOCAB) * ctx_mask
    input_t_ids = jax.random.randint(ka, (B, S_ASP), 1, VOCAB) * asp_mask
    token_type_ids = jnp.zeros((B, S_CTX), jnp.int32)
    segment_t_ids = jnp.zeros((B, S_ASP), jnp.int32)

    forward = jax.jit(partial(bert_ian_forward, n_heads=N_HEADS))
    logits = forward(params, input_ids, token_type_ids, ctx_mask,
                     input_t_ids, asp_mask, segment_t_ids)
    jax.block_until_ready(logits)
    assert logits.shape == (B, OUT_DIM)
    assert bool(jnp.all(jnp.isfinite(logits)))
    print("KERNEL_OK")
</pallas_src>

<mosaic_0001>
module attributes {stable_mosaic.version = 11 : i64} {
  func.func @_ln_kernel(%arg0: i32, %arg1: memref<16x32xf32, #tpu.memory_space<vmem>>, %arg2: memref<1x32xf32, #tpu.memory_space<vmem>>, %arg3: memref<1x32xf32, #tpu.memory_space<vmem>>, %arg4: memref<16x32xf32, #tpu.memory_space<vmem>>) attributes {dimension_semantics = [#tpu.dimension_semantics<parallel>], iteration_bounds = array<i64: 1>, scalar_prefetch = 0 : i64, scratch_operands = 0 : i64, tpu.core_type = #tpu.core_type<tc>, window_params = [{transform_indices = @transform_0, window_bounds = array<i64: 16, 32>}, {pipeline_mode = #tpu.pipeline_mode<synchronous>, transform_indices = @transform_1, window_bounds = array<i64: 1, 32>}, {pipeline_mode = #tpu.pipeline_mode<synchronous>, transform_indices = @transform_2, window_bounds = array<i64: 1, 32>}, {transform_indices = @transform_3, window_bounds = array<i64: 16, 32>}]} {
    %c0 = arith.constant 0 : index
    %c0_0 = arith.constant 0 : index
    %0 = vector.load %arg1[%c0, %c0_0] : memref<16x32xf32, #tpu.memory_space<vmem>>, vector<16x32xf32>
    %cst = arith.constant dense<0.000000e+00> : vector<16xf32>
    %1 = vector.multi_reduction <add>, %0, %cst [1] : vector<16x32xf32> to vector<16xf32>
    %2 = vector.shape_cast %1 : vector<16xf32> to vector<16x1xf32>
    %cst_1 = arith.constant 3.200000e+01 : f32
    %3 = vector.broadcast %cst_1 : f32 to vector<16x1xf32>
    %4 = arith.divf %2, %3 : vector<16x1xf32>
    %5 = vector.broadcast %4 : vector<16x1xf32> to vector<16x32xf32>
    %6 = arith.subf %0, %5 : vector<16x32xf32>
    %7 = arith.mulf %6, %6 : vector<16x32xf32>
    %cst_2 = arith.constant dense<0.000000e+00> : vector<16xf32>
    %8 = vector.multi_reduction <add>, %7, %cst_2 [1] : vector<16x32xf32> to vector<16xf32>
    %9 = vector.shape_cast %8 : vector<16xf32> to vector<16x1xf32>
    %cst_3 = arith.constant 3.200000e+01 : f32
    %10 = vector.broadcast %cst_3 : f32 to vector<16x1xf32>
    %11 = arith.divf %9, %10 : vector<16x1xf32>
    %12 = vector.broadcast %4 : vector<16x1xf32> to vector<16x32xf32>
    %13 = arith.subf %0, %12 : vector<16x32xf32>
    %cst_4 = arith.constant 9.99999996E-13 : f32
    %14 = vector.broadcast %cst_4 : f32 to vector<16x1xf32>
    %15 = arith.addf %11, %14 : vector<16x1xf32>
    %16 = math.rsqrt %15 : vector<16x1xf32>
    %17 = vector.broadcast %16 : vector<16x1xf32> to vector<16x32xf32>
    %18 = arith.mulf %13, %17 : vector<16x32xf32>
    %c0_5 = arith.constant 0 : index
    %c0_6 = arith.constant 0 : index
    %19 = vector.load %arg2[%c0_5, %c0_6] : memref<1x32xf32, #tpu.memory_space<vmem>>, vector<1x32xf32>
    %20 = vector.broadcast %19 : vector<1x32xf32> to vector<16x32xf32>
    %21 = arith.mulf %18, %20 : vector<16x32xf32>
    %c0_7 = arith.constant 0 : index
    %c0_8 = arith.constant 0 : index
    %22 = vector.load %arg3[%c0_7, %c0_8] : memref<1x32xf32, #tpu.memory_space<vmem>>, vector<1x32xf32>
    %23 = vector.broadcast %22 : vector<1x32xf32> to vector<16x32xf32>
    %24 = arith.addf %21, %23 : vector<16x32xf32>
    %c0_9 = arith.constant 0 : index
    %c0_10 = arith.constant 0 : index
    %25 = vector.load %arg4[%c0_9, %c0_10] : memref<16x32xf32, #tpu.memory_space<vmem>>, vector<16x32xf32>
    tpu.vector_store %arg4[%c0_9, %c0_10], %24 {strides = array<i32>} : memref<16x32xf32, #tpu.memory_space<vmem>>, vector<16x32xf32>,
    return
  }
  func.func @transform_0(%arg0: i32) -> (i32, i32) {
    %c0_i32 = arith.constant 0 : i32
    %c0_i32_0 = arith.constant 0 : i32
    return %arg0, %c0_i32 : i32, i32
  }
  func.func @transform_1(%arg0: i32) -> (i32, i32) {
    %c0_i32 = arith.constant 0 : i32
    %c0_i32_0 = arith.constant 0 : i32
    %c0_i32_1 = arith.constant 0 : i32
    return %c0_i32, %c0_i32_0 : i32, i32
  }
  func.func @transform_2(%arg0: i32) -> (i32, i32) {
    %c0_i32 = arith.constant 0 : i32
    %c0_i32_0 = arith.constant 0 : i32
    %c0_i32_1 = arith.constant 0 : i32
    return %c0_i32, %c0_i32_0 : i32, i32
  }
  func.func @transform_3(%arg0: i32) -> (i32, i32) {
    %c0_i32 = arith.constant 0 : i32
    %c0_i32_0 = arith.constant 0 : i32
    return %arg0, %c0_i32 : i32, i32
  }
}

module attributes {stable_mosaic.version = 11 : i64} {
  func.func @_linear_kernel(%arg0: i32, %arg1: i32, %arg2: i32, %arg3: memref<16x32xf32, #tpu.memory_space<vmem>>, %arg4: memref<32x96xf32, #tpu.memory_space<vmem>>, %arg5: memref<1x96xf32, #tpu.memory_space<vmem>>, %arg6: memref<16x96xf32, #tpu.memory_space<vmem>>, %arg7: memref<16x96xf32, #tpu.memory_space<vmem>>) attributes {dimension_semantics = [#tpu.dimension_semantics<parallel>, #tpu.dimension_semantics<parallel>, #tpu.dimension_semantics<arbitrary>], iteration_bounds = array<i64: 1, 1, 1>, scalar_prefetch = 0 : i64, scratch_operands = 1 : i64, tpu.core_type = #tpu.core_type<tc>, window_params = [{transform_indices = @transform_0, window_bounds = array<i64: 16, 32>}, {transform_indices = @transform_1, window_bounds = array<i64: 32, 96>}, {transform_indices = @transform_2, window_bounds = array<i64: 1, 96>}, {transform_indices = @transform_3, window_bounds = array<i64: 16, 96>}]} {
    %c0_i32 = arith.constant 0 : i32
    %0 = arith.cmpi eq, %arg2, %c0_i32 : i32
    %1 = arith.extui %0 : i1 to i32
    %c0_i32_0 = arith.constant 0 : i32
    %2 = arith.cmpi ne, %1, %c0_i32_0 : i32
    scf.if %2 {
      %cst_10 = arith.constant 0.000000e+00 : f32
      %12 = vector.broadcast %cst_10 : f32 to vector<16x96xf32>
      %c0_11 = arith.constant 0 : index
      %c0_12 = arith.constant 0 : index
      %13 = vector.load %arg7[%c0_11, %c0_12] : memref<16x96xf32, #tpu.memory_space<vmem>>, vector<16x96xf32>
      tpu.vector_store %arg7[%c0_11, %c0_12], %12 {strides = array<i32>} : memref<16x96xf32, #tpu.memory_space<vmem>>, vector<16x96xf32>,
    } else {
    }
    %c0 = arith.constant 0 : index
    %c0_1 = arith.constant 0 : index
    %3 = vector.load %arg7[%c0, %c0_1] : memref<16x96xf32, #tpu.memory_space<vmem>>, vector<16x96xf32>
    %c0_2 = arith.constant 0 : index
    %c0_3 = arith.constant 0 : index
    %4 = vector.load %arg3[%c0_2, %c0_3] : memref<16x32xf32, #tpu.memory_space<vmem>>, vector<16x32xf32>
    %c0_4 = arith.constant 0 : index
    %c0_5 = arith.constant 0 : index
    %5 = vector.load %arg4[%c0_4, %c0_5] : memref<32x96xf32, #tpu.memory_space<vmem>>, vector<32x96xf32>
    %cst = arith.constant dense<0.000000e+00> : vector<16x96xf32>
    %6 = tpu.matmul %4, %5, %cst {dimension_numbers = #tpu.dot_dimension_numbers<[1], [0], [0], [1], [0, 0, 1, 1], [], []>} : vector<16x32xf32>, vector<32x96xf32>, vector<16x96xf32> -> vector<16x96xf32>
    %7 = arith.addf %3, %6 : vector<16x96xf32>
    %c0_6 = arith.constant 0 : index
    %c0_7 = arith.constant 0 : index
    %8 = vector.load %arg7[%c0_6, %c0_7] : memref<16x96xf32, #tpu.memory_space<vmem>>, vector<16x96xf32>
    tpu.vector_store %arg7[%c0_6, %c0_7], %7 {strides = array<i32>} : memref<16x96xf32, #tpu.memory_space<vmem>>, vector<16x96xf32>,
    %c0_i32_8 = arith.constant 0 : i32
    %9 = arith.cmpi eq, %arg2, %c0_i32_8 : i32
    %10 = arith.extui %9 : i1 to i32
    %c0_i32_9 = arith.constant 0 : i32
    %11 = arith.cmpi ne, %10, %c0_i32_9 : i32
    scf.if %11 {
      %c0_10 = arith.constant 0 : index
      %c0_11 = arith.constant 0 : index
      %12 = vector.load %arg7[%c0_10, %c0_11] : memref<16x96xf32, #tpu.memory_space<vmem>>, vector<16x96xf32>
      %c0_12 = arith.constant 0 : index
      %c0_13 = arith.constant 0 : index
      %13 = vector.load %arg5[%c0_12, %c0_13] : memref<1x96xf32, #tpu.memory_space<vmem>>, vector<1x96xf32>
      %14 = vector.broadcast %13 : vector<1x96xf32> to vector<16x96xf32>
      %15 = arith.addf %12, %14 : vector<16x96xf32>
      %c0_14 = arith.constant 0 : index
      %c0_15 = arith.constant 0 : index
      %16 = vector.load %arg6[%c0_14, %c0_15] : memref<16x96xf32, #tpu.memory_space<vmem>>, vector<16x96xf32>
      tpu.vector_store %arg6[%c0_14, %c0_15], %15 {strides = array<i32>} : memref<16x96xf32, #tpu.memory_space<vmem>>, vector<16x96xf32>,
    } else {
    }
    return
  }
  func.func @transform_0(%arg0: i32, %arg1: i32, %arg2: i32) -> (i32, i32) {
    %c0_i32 = arith.constant 0 : i32
    return %arg0, %arg2 : i32, i32
  }
  func.func @transform_1(%arg0: i32, %arg1: i32, %arg2: i32) -> (i32, i32) {
    %c0_i32 = arith.constant 0 : i32
    return %arg2, %arg1 : i32, i32
  }
  func.func @transform_2(%arg0: i32, %arg1: i32, %arg2: i32) -> (i32, i32) {
    %c0_i32 = arith.constant 0 : i32
    %c0_i32_0 = arith.constant 0 : i32
    return %c0_i32, %arg1 : i32, i32
  }
  func.func @transform_3(%arg0: i32, %arg1: i32, %arg2: i32) -> (i32, i32) {
    %c0_i32 = arith.constant 0 : i32
    return %arg0, %arg1 : i32, i32
  }
}

module attributes {stable_mosaic.version = 11 : i64} {
  func.func @_mhsa_kernel(%arg0: i32, %arg1: memref<1x8x96xf32, #tpu.memory_space<vmem>>, %arg2: memref<1x1x8xf32, #tpu.memory_space<vmem>>, %arg3: memref<1x8x32xf32, #tpu.memory_space<vmem>>) attributes {dimension_semantics = [#tpu.dimension_semantics<parallel>], iteration_bounds = array<i64: 2>, scalar_prefetch = 0 : i64, scratch_operands = 0 : i64, tpu.core_type = #tpu.core_type<tc>, window_params = [{transform_indices = @transform_0, window_bounds = array<i64: 1, 8, 96>}, {transform_indices = @transform_1, window_bounds = array<i64: 1, 1, 8>}, {transform_indices = @transform_2, window_bounds = array<i64: 1, 8, 32>}]} {
    %c0 = arith.constant 0 : index
    %c0_0 = arith.constant 0 : index
    %c0_1 = arith.constant 0 : index
    %0 = vector.load %arg1[%c0, %c0_0, %c0_1] : memref<1x8x96xf32, #tpu.memory_space<vmem>>, vector<1x8x96xf32>
    %1 = vector.shape_cast %0 : vector<1x8x96xf32> to vector<8x96xf32>
    %c0_2 = arith.constant 0 : index
    %c0_3 = arith.constant 0 : index
    %c0_4 = arith.constant 0 : index
    %2 = vector.load %arg2[%c0_2, %c0_3, %c0_4] : memref<1x1x8xf32, #tpu.memory_space<vmem>>, vector<1x1x8xf32>
    %3 = vector.shape_cast %2 : vector<1x1x8xf32> to vector<1x8xf32>
    %4 = vector.extract_strided_slice %1 {offsets = [0, 0], sizes = [8, 32], strides = [1, 1]} : vector<8x96xf32> to vector<8x32xf32>
    %5 = vector.extract_strided_slice %1 {offsets = [0, 32], sizes = [8, 32], strides = [1, 1]} : vector<8x96xf32> to vector<8x32xf32>
    %6 = vector.extract_strided_slice %1 {offsets = [0, 64], sizes = [8, 32], strides = [1, 1]} : vector<8x96xf32> to vector<8x32xf32>
    %7 = vector.extract_strided_slice %4 {offsets = [0, 0], sizes = [8, 16], strides = [1, 1]} : vector<8x32xf32> to vector<8x16xf32>
    %cst = arith.constant 2.500000e-01 : f32
    %8 = vector.broadcast %cst : f32 to vector<8x16xf32>
    %9 = arith.mulf %7, %8 : vector<8x16xf32>
    %10 = vector.extract_strided_slice %5 {offsets = [0, 0], sizes = [8, 16], strides = [1, 1]} : vector<8x32xf32> to vector<8x16xf32>
    %11 = vector.extract_strided_slice %6 {offsets = [0, 0], sizes = [8, 16], strides = [1, 1]} : vector<8x32xf32> to vector<8x16xf32>
    %cst_5 = arith.constant dense<0.000000e+00> : vector<8x8xf32>
    %12 = tpu.matmul %9, %10, %cst_5 {dimension_numbers = #tpu.dot_dimension_numbers<[1], [1], [0], [0], [0, 0, 1, 0], [], []>} : vector<8x16xf32>, vector<8x16xf32>, vector<8x8xf32> -> vector<8x8xf32>
    %13 = vector.broadcast %3 : vector<1x8xf32> to vector<8x8xf32>
    %14 = arith.addf %12, %13 : vector<8x8xf32>
    %cst_6 = arith.constant dense<0xFF800000> : vector<8xf32>
    %15 = vector.multi_reduction <maximumf>, %14, %cst_6 [1] : vector<8x8xf32> to vector<8xf32>
    %16 = vector.shape_cast %15 : vector<8xf32> to vector<8x1xf32>
    %17 = vector.broadcast %16 : vector<8x1xf32> to vector<8x8xf32>
    %18 = arith.subf %14, %17 : vector<8x8xf32>
    %19 = math.exp %18 : vector<8x8xf32>
    %cst_7 = arith.constant dense<0.000000e+00> : vector<8xf32>
    %20 = vector.multi_reduction <add>, %19, %cst_7 [1] : vector<8x8xf32> to vector<8xf32>
    %21 = vector.shape_cast %20 : vector<8xf32> to vector<8x1xf32>
    %22 = tpu.reciprocal %21 {approx = true} : vector<8x1xf32> -> vector<8x1xf32>
    %23 = vector.broadcast %22 : vector<8x1xf32> to vector<8x8xf32>
    %24 = arith.mulf %19, %23 : vector<8x8xf32>
    %cst_8 = arith.constant dense<0.000000e+00> : vector<8x16xf32>
    %25 = tpu.matmul %24, %11, %cst_8 {dimension_numbers = #tpu.dot_dimension_numbers<[1], [0], [0], [1], [0, 0, 1, 1], [], []>} : vector<8x8xf32>, vector<8x16xf32>, vector<8x16xf32> -> vector<8x16xf32>
    %26 = vector.extract_strided_slice %4 {offsets = [0, 16], sizes = [8, 16], strides = [1, 1]} : vector<8x32xf32> to vector<8x16xf32>
    %cst_9 = arith.constant 2.500000e-01 : f32
    %27 = vector.broadcast %cst_9 : f32 to vector<8x16xf32>
    %28 = arith.mulf %26, %27 : vector<8x16xf32>
    %29 = vector.extract_strided_slice %5 {offsets = [0, 16], sizes = [8, 16], strides = [1, 1]} : vector<8x32xf32> to vector<8x16xf32>
    %30 = vector.extract_strided_slice %6 {offsets = [0, 16], sizes = [8, 16], strides = [1, 1]} : vector<8x32xf32> to vector<8x16xf32>
    %cst_10 = arith.constant dense<0.000000e+00> : vector<8x8xf32>
    %31 = tpu.matmul %28, %29, %cst_10 {dimension_numbers = #tpu.dot_dimension_numbers<[1], [1], [0], [0], [0, 0, 1, 0], [], []>} : vector<8x16xf32>, vector<8x16xf32>, vector<8x8xf32> -> vector<8x8xf32>
    %32 = vector.broadcast %3 : vector<1x8xf32> to vector<8x8xf32>
    %33 = arith.addf %31, %32 : vector<8x8xf32>
    %cst_11 = arith.constant dense<0xFF800000> : vector<8xf32>
    %34 = vector.multi_reduction <maximumf>, %33, %cst_11 [1] : vector<8x8xf32> to vector<8xf32>
    %35 = vector.shape_cast %34 : vector<8xf32> to vector<8x1xf32>
    %36 = vector.broadcast %35 : vector<8x1xf32> to vector<8x8xf32>
    %37 = arith.subf %33, %36 : vector<8x8xf32>
    %38 = math.exp %37 : vector<8x8xf32>
    %cst_12 = arith.constant dense<0.000000e+00> : vector<8xf32>
    %39 = vector.multi_reduction <add>, %38, %cst_12 [1] : vector<8x8xf32> to vector<8xf32>
    %40 = vector.shape_cast %39 : vector<8xf32> to vector<8x1xf32>
    %41 = tpu.reciprocal %40 {approx = true} : vector<8x1xf32> -> vector<8x1xf32>
    %42 = vector.broadcast %41 : vector<8x1xf32> to vector<8x8xf32>
    %43 = arith.mulf %38, %42 : vector<8x8xf32>
    %cst_13 = arith.constant dense<0.000000e+00> : vector<8x16xf32>
    %44 = tpu.matmul %43, %30, %cst_13 {dimension_numbers = #tpu.dot_dimension_numbers<[1], [0], [0], [1], [0, 0, 1, 1], [], []>} : vector<8x8xf32>, vector<8x16xf32>, vector<8x16xf32> -> vector<8x16xf32>
    %45 = tpu.concatenate %25, %44 in 1 : vector<8x16xf32>, vector<8x16xf32> -> vector<8x32xf32>
    %c0_14 = arith.constant 0 : index
    %c0_15 = arith.constant 0 : index
    %c0_16 = arith.constant 0 : index
    %46 = vector.load %arg3[%c0_14, %c0_15, %c0_16] : memref<1x8x32xf32, #tpu.memory_space<vmem>>, vector<1x8x32xf32>
    %47 = vector.shape_cast %46 : vector<1x8x32xf32> to vector<8x32xf32>
    %48 = vector.shape_cast %45 : vector<8x32xf32> to vector<1x8x32xf32>
    tpu.vector_store %arg3[%c0_14, %c0_15, %c0_16], %48 {strides = array<i32>} : memref<1x8x32xf32, #tpu.memory_space<vmem>>, vector<1x8x32xf32>,
    return
  }
  func.func @transform_0(%arg0: i32) -> (i32, i32, i32) {
    %c0_i32 = arith.constant 0 : i32
    %c0_i32_0 = arith.constant 0 : i32
    %c0_i32_1 = arith.constant 0 : i32
    return %arg0, %c0_i32, %c0_i32_0 : i32, i32, i32
  }
  func.func @transform_1(%arg0: i32) -> (i32, i32, i32) {
    %c0_i32 = arith.constant 0 : i32
    %c0_i32_0 = arith.constant 0 : i32
    %c0_i32_1 = arith.constant 0 : i32
    return %arg0, %c0_i32, %c0_i32_0 : i32, i32, i32
  }
  func.func @transform_2(%arg0: i32) -> (i32, i32, i32) {
    %c0_i32 = arith.constant 0 : i32
    %c0_i32_0 = arith.constant 0 : i32
    %c0_i32_1 = arith.constant 0 : i32
    return %arg0, %c0_i32, %c0_i32_0 : i32, i32, i32
  }
}

module attributes {stable_mosaic.version = 11 : i64} {
  func.func @_linear_kernel(%arg0: i32, %arg1: i32, %arg2: i32, %arg3: memref<16x32xf32, #tpu.memory_space<vmem>>, %arg4: memref<32x32xf32, #tpu.memory_space<vmem>>, %arg5: memref<1x32xf32, #tpu.memory_space<vmem>>, %arg6: memref<16x32xf32, #tpu.memory_space<vmem>>, %arg7: memref<16x32xf32, #tpu.memory_space<vmem>>) attributes {dimension_semantics = [#tpu.dimension_semantics<parallel>, #tpu.dimension_semantics<parallel>, #tpu.dimension_semantics<arbitrary>], iteration_bounds = array<i64: 1, 1, 1>, scalar_prefetch = 0 : i64, scratch_operands = 1 : i64, tpu.core_type = #tpu.core_type<tc>, window_params = [{transform_indices = @transform_0, window_bounds = array<i64: 16, 32>}, {transform_indices = @transform_1, window_bounds = array<i64: 32, 32>}, {transform_indices = @transform_2, window_bounds = array<i64: 1, 32>}, {transform_indices = @transform_3, window_bounds = array<i64: 16, 32>}]} {
    %c0_i32 = arith.constant 0 : i32
    %0 = arith.cmpi eq, %arg2, %c0_i32 : i32
    %1 = arith.extui %0 : i1 to i32
    %c0_i32_0 = arith.constant 0 : i32
    %2 = arith.cmpi ne, %1, %c0_i32_0 : i32
    scf.if %2 {
      %cst_10 = arith.constant 0.000000e+00 : f32
      %12 = vector.broadcast %cst_10 : f32 to vector<16x32xf32>
      %c0_11 = arith.constant 0 : index
      %c0_12 = arith.constant 0 : index
      %13 = vector.load %arg7[%c0_11, %c0_12] : memref<16x32xf32, #tpu.memory_space<vmem>>, vector<16x32xf32>
      tpu.vector_store %arg7[%c0_11, %c0_12], %12 {strides = array<i32>} : memref<16x32xf32, #tpu.memory_space<vmem>>, vector<16x32xf32>,
    } else {
    }
    %c0 = arith.constant 0 : index
    %c0_1 = arith.constant 0 : index
    %3 = vector.load %arg7[%c0, %c0_1] : memref<16x32xf32, #tpu.memory_space<vmem>>, vector<16x32xf32>
    %c0_2 = arith.constant 0 : index
    %c0_3 = arith.constant 0 : index
    %4 = vector.load %arg3[%c0_2, %c0_3] : memref<16x32xf32, #tpu.memory_space<vmem>>, vector<16x32xf32>
    %c0_4 = arith.constant 0 : index
    %c0_5 = arith.constant 0 : index
    %5 = vector.load %arg4[%c0_4, %c0_5] : memref<32x32xf32, #tpu.memory_space<vmem>>, vector<32x32xf32>
    %cst = arith.constant dense<0.000000e+00> : vector<16x32xf32>
    %6 = tpu.matmul %4, %5, %cst {dimension_numbers = #tpu.dot_dimension_numbers<[1], [0], [0], [1], [0, 0, 1, 1], [], []>} : vector<16x32xf32>, vector<32x32xf32>, vector<16x32xf32> -> vector<16x32xf32>
    %7 = arith.addf %3, %6 : vector<16x32xf32>
    %c0_6 = arith.constant 0 : index
    %c0_7 = arith.constant 0 : index
    %8 = vector.load %arg7[%c0_6, %c0_7] : memref<16x32xf32, #tpu.memory_space<vmem>>, vector<16x32xf32>
    tpu.vector_store %arg7[%c0_6, %c0_7], %7 {strides = array<i32>} : memref<16x32xf32, #tpu.memory_space<vmem>>, vector<16x32xf32>,
    %c0_i32_8 = arith.constant 0 : i32
    %9 = arith.cmpi eq, %arg2, %c0_i32_8 : i32
    %10 = arith.extui %9 : i1 to i32
    %c0_i32_9 = arith.constant 0 : i32
    %11 = arith.cmpi ne, %10, %c0_i32_9 : i32
    scf.if %11 {
      %c0_10 = arith.constant 0 : index
      %c0_11 = arith.constant 0 : index
      %12 = vector.load %arg7[%c0_10, %c0_11] : memref<16x32xf32, #tpu.memory_space<vmem>>, vector<16x32xf32>
      %c0_12 = arith.constant 0 : index
      %c0_13 = arith.constant 0 : index
      %13 = vector.load %arg5[%c0_12, %c0_13] : memref<1x32xf32, #tpu.memory_space<vmem>>, vector<1x32xf32>
      %14 = vector.broadcast %13 : vector<1x32xf32> to vector<16x32xf32>
      %15 = arith.addf %12, %14 : vector<16x32xf32>
      %c0_14 = arith.constant 0 : index
      %c0_15 = arith.constant 0 : index
      %16 = vector.load %arg6[%c0_14, %c0_15] : memref<16x32xf32, #tpu.memory_space<vmem>>, vector<16x32xf32>
      tpu.vector_store %arg6[%c0_14, %c0_15], %15 {strides = array<i32>} : memref<16x32xf32, #tpu.memory_space<vmem>>, vector<16x32xf32>,
    } else {
    }
    return
  }
  func.func @transform_0(%arg0: i32, %arg1: i32, %arg2: i32) -> (i32, i32) {
    %c0_i32 = arith.constant 0 : i32
    return %arg0, %arg2 : i32, i32
  }
  func.func @transform_1(%arg0: i32, %arg1: i32, %arg2: i32) -> (i32, i32) {
    %c0_i32 = arith.constant 0 : i32
    return %arg2, %arg1 : i32, i32
  }
  func.func @transform_2(%arg0: i32, %arg1: i32, %arg2: i32) -> (i32, i32) {
    %c0_i32 = arith.constant 0 : i32
    %c0_i32_0 = arith.constant 0 : i32
    return %c0_i32, %arg1 : i32, i32
  }
  func.func @transform_3(%arg0: i32, %arg1: i32, %arg2: i32) -> (i32, i32) {
    %c0_i32 = arith.constant 0 : i32
    return %arg0, %arg1 : i32, i32
  }
}

module attributes {stable_mosaic.version = 11 : i64} {
  func.func @_add_ln_kernel(%arg0: i32, %arg1: memref<16x32xf32, #tpu.memory_space<vmem>>, %arg2: memref<16x32xf32, #tpu.memory_space<vmem>>, %arg3: memref<1x32xf32, #tpu.memory_space<vmem>>, %arg4: memref<1x32xf32, #tpu.memory_space<vmem>>, %arg5: memref<16x32xf32, #tpu.memory_space<vmem>>) attributes {dimension_semantics = [#tpu.dimension_semantics<parallel>], iteration_bounds = array<i64: 1>, scalar_prefetch = 0 : i64, scratch_operands = 0 : i64, tpu.core_type = #tpu.core_type<tc>, window_params = [{transform_indices = @transform_0, window_bounds = array<i64: 16, 32>}, {transform_indices = @transform_1, window_bounds = array<i64: 16, 32>}, {pipeline_mode = #tpu.pipeline_mode<synchronous>, transform_indices = @transform_2, window_bounds = array<i64: 1, 32>}, {pipeline_mode = #tpu.pipeline_mode<synchronous>, transform_indices = @transform_3, window_bounds = array<i64: 1, 32>}, {transform_indices = @transform_4, window_bounds = array<i64: 16, 32>}]} {
    %c0 = arith.constant 0 : index
    %c0_0 = arith.constant 0 : index
    %0 = vector.load %arg1[%c0, %c0_0] : memref<16x32xf32, #tpu.memory_space<vmem>>, vector<16x32xf32>
    %c0_1 = arith.constant 0 : index
    %c0_2 = arith.constant 0 : index
    %1 = vector.load %arg2[%c0_1, %c0_2] : memref<16x32xf32, #tpu.memory_space<vmem>>, vector<16x32xf32>
    %2 = arith.addf %0, %1 : vector<16x32xf32>
    %cst = arith.constant dense<0.000000e+00> : vector<16xf32>
    %3 = vector.multi_reduction <add>, %2, %cst [1] : vector<16x32xf32> to vector<16xf32>
    %4 = vector.shape_cast %3 : vector<16xf32> to vector<16x1xf32>
    %cst_3 = arith.constant 3.200000e+01 : f32
    %5 = vector.broadcast %cst_3 : f32 to vector<16x1xf32>
    %6 = arith.divf %4, %5 : vector<16x1xf32>
    %7 = vector.broadcast %6 : vector<16x1xf32> to vector<16x32xf32>
    %8 = arith.subf %2, %7 : vector<16x32xf32>
    %9 = arith.mulf %8, %8 : vector<16x32xf32>
    %cst_4 = arith.constant dense<0.000000e+00> : vector<16xf32>
    %10 = vector.multi_reduction <add>, %9, %cst_4 [1] : vector<16x32xf32> to vector<16xf32>
    %11 = vector.shape_cast %10 : vector<16xf32> to vector<16x1xf32>
    %cst_5 = arith.constant 3.200000e+01 : f32
    %12 = vector.broadcast %cst_5 : f32 to vector<16x1xf32>
    %13 = arith.divf %11, %12 : vector<16x1xf32>
    %14 = vector.broadcast %6 : vector<16x1xf32> to vector<16x32xf32>
    %15 = arith.subf %2, %14 : vector<16x32xf32>
    %cst_6 = arith.constant 9.99999996E-13 : f32
    %16 = vector.broadcast %cst_6 : f32 to vector<16x1xf32>
    %17 = arith.addf %13, %16 : vector<16x1xf32>
    %18 = math.rsqrt %17 : vector<16x1xf32>
    %19 = vector.broadcast %18 : vector<16x1xf32> to vector<16x32xf32>
    %20 = arith.mulf %15, %19 : vector<16x32xf32>
    %c0_7 = arith.constant 0 : index
    %c0_8 = arith.constant 0 : index
    %21 = vector.load %arg3[%c0_7, %c0_8] : memref<1x32xf32, #tpu.memory_space<vmem>>, vector<1x32xf32>
    %22 = vector.broadcast %21 : vector<1x32xf32> to vector<16x32xf32>
    %23 = arith.mulf %20, %22 : vector<16x32xf32>
    %c0_9 = arith.constant 0 : index
    %c0_10 = arith.constant 0 : index
    %24 = vector.load %arg4[%c0_9, %c0_10] : memref<1x32xf32, #tpu.memory_space<vmem>>, vector<1x32xf32>
    %25 = vector.broadcast %24 : vector<1x32xf32> to vector<16x32xf32>
    %26 = arith.addf %23, %25 : vector<16x32xf32>
    %c0_11 = arith.constant 0 : index
    %c0_12 = arith.constant 0 : index
    %27 = vector.load %arg5[%c0_11, %c0_12] : memref<16x32xf32, #tpu.memory_space<vmem>>, vector<16x32xf32>
    tpu.vector_store %arg5[%c0_11, %c0_12], %26 {strides = array<i32>} : memref<16x32xf32, #tpu.memory_space<vmem>>, vector<16x32xf32>,
    return
  }
  func.func @transform_0(%arg0: i32) -> (i32, i32) {
    %c0_i32 = arith.constant 0 : i32
    %c0_i32_0 = arith.constant 0 : i32
    return %arg0, %c0_i32 : i32, i32
  }
  func.func @transform_1(%arg0: i32) -> (i32, i32) {
    %c0_i32 = arith.constant 0 : i32
    %c0_i32_0 = arith.constant 0 : i32
    return %arg0, %c0_i32 : i32, i32
  }
  func.func @transform_2(%arg0: i32) -> (i32, i32) {
    %c0_i32 = arith.constant 0 : i32
    %c0_i32_0 = arith.constant 0 : i32
    %c0_i32_1 = arith.constant 0 : i32
    return %c0_i32, %c0_i32_0 : i32, i32
  }
  func.func @transform_3(%arg0: i32) -> (i32, i32) {
    %c0_i32 = arith.constant 0 : i32
    %c0_i32_0 = arith.constant 0 : i32
    %c0_i32_1 = arith.constant 0 : i32
    return %c0_i32, %c0_i32_0 : i32, i32
  }
  func.func @transform_4(%arg0: i32) -> (i32, i32) {
    %c0_i32 = arith.constant 0 : i32
    %c0_i32_0 = arith.constant 0 : i32
    return %arg0, %c0_i32 : i32, i32
  }
}

module attributes {stable_mosaic.version = 11 : i64} {
  func.func @_linear_kernel(%arg0: i32, %arg1: i32, %arg2: i32, %arg3: memref<16x64xf32, #tpu.memory_space<vmem>>, %arg4: memref<64x32xf32, #tpu.memory_space<vmem>>, %arg5: memref<1x32xf32, #tpu.memory_space<vmem>>, %arg6: memref<16x32xf32, #tpu.memory_space<vmem>>, %arg7: memref<16x32xf32, #tpu.memory_space<vmem>>) attributes {dimension_semantics = [#tpu.dimension_semantics<parallel>, #tpu.dimension_semantics<parallel>, #tpu.dimension_semantics<arbitrary>], iteration_bounds = array<i64: 1, 1, 1>, scalar_prefetch = 0 : i64, scratch_operands = 1 : i64, tpu.core_type = #tpu.core_type<tc>, window_params = [{transform_indices = @transform_0, window_bounds = array<i64: 16, 64>}, {transform_indices = @transform_1, window_bounds = array<i64: 64, 32>}, {transform_indices = @transform_2, window_bounds = array<i64: 1, 32>}, {transform_indices = @transform_3, window_bounds = array<i64: 16, 32>}]} {
    %c0_i32 = arith.constant 0 : i32
    %0 = arith.cmpi eq, %arg2, %c0_i32 : i32
    %1 = arith.extui %0 : i1 to i32
    %c0_i32_0 = arith.constant 0 : i32
    %2 = arith.cmpi ne, %1, %c0_i32_0 : i32
    scf.if %2 {
      %cst_10 = arith.constant 0.000000e+00 : f32
      %12 = vector.broadcast %cst_10 : f32 to vector<16x32xf32>
      %c0_11 = arith.constant 0 : index
      %c0_12 = arith.constant 0 : index
      %13 = vector.load %arg7[%c0_11, %c0_12] : memref<16x32xf32, #tpu.memory_space<vmem>>, vector<16x32xf32>
      tpu.vector_store %arg7[%c0_11, %c0_12], %12 {strides = array<i32>} : memref<16x32xf32, #tpu.memory_space<vmem>>, vector<16x32xf32>,
    } else {
    }
    %c0 = arith.constant 0 : index
    %c0_1 = arith.constant 0 : index
    %3 = vector.load %arg7[%c0, %c0_1] : memref<16x32xf32, #tpu.memory_space<vmem>>, vector<16x32xf32>
    %c0_2 = arith.constant 0 : index
    %c0_3 = arith.constant 0 : index
    %4 = vector.load %arg3[%c0_2, %c0_3] : memref<16x64xf32, #tpu.memory_space<vmem>>, vector<16x64xf32>
    %c0_4 = arith.constant 0 : index
    %c0_5 = arith.constant 0 : index
    %5 = vector.load %arg4[%c0_4, %c0_5] : memref<64x32xf32, #tpu.memory_space<vmem>>, vector<64x32xf32>
    %cst = arith.constant dense<0.000000e+00> : vector<16x32xf32>
    %6 = tpu.matmul %4, %5, %cst {dimension_numbers = #tpu.dot_dimension_numbers<[1], [0], [0], [1], [0, 0, 1, 1], [], []>} : vector<16x64xf32>, vector<64x32xf32>, vector<16x32xf32> -> vector<16x32xf32>
    %7 = arith.addf %3, %6 : vector<16x32xf32>
    %c0_6 = arith.constant 0 : index
    %c0_7 = arith.constant 0 : index
    %8 = vector.load %arg7[%c0_6, %c0_7] : memref<16x32xf32, #tpu.memory_space<vmem>>, vector<16x32xf32>
    tpu.vector_store %arg7[%c0_6, %c0_7], %7 {strides = array<i32>} : memref<16x32xf32, #tpu.memory_space<vmem>>, vector<16x32xf32>,
    %c0_i32_8 = arith.constant 0 : i32
    %9 = arith.cmpi eq, %arg2, %c0_i32_8 : i32
    %10 = arith.extui %9 : i1 to i32
    %c0_i32_9 = arith.constant 0 : i32
    %11 = arith.cmpi ne, %10, %c0_i32_9 : i32
    scf.if %11 {
      %c0_10 = arith.constant 0 : index
      %c0_11 = arith.constant 0 : index
      %12 = vector.load %arg7[%c0_10, %c0_11] : memref<16x32xf32, #tpu.memory_space<vmem>>, vector<16x32xf32>
      %c0_12 = arith.constant 0 : index
      %c0_13 = arith.constant 0 : index
      %13 = vector.load %arg5[%c0_12, %c0_13] : memref<1x32xf32, #tpu.memory_space<vmem>>, vector<1x32xf32>
      %14 = vector.broadcast %13 : vector<1x32xf32> to vector<16x32xf32>
      %15 = arith.addf %12, %14 : vector<16x32xf32>
      %c0_14 = arith.constant 0 : index
      %c0_15 = arith.constant 0 : index
      %16 = vector.load %arg6[%c0_14, %c0_15] : memref<16x32xf32, #tpu.memory_space<vmem>>, vector<16x32xf32>
      tpu.vector_store %arg6[%c0_14, %c0_15], %15 {strides = array<i32>} : memref<16x32xf32, #tpu.memory_space<vmem>>, vector<16x32xf32>,
    } else {
    }
    return
  }
  func.func @transform_0(%arg0: i32, %arg1: i32, %arg2: i32) -> (i32, i32) {
    %c0_i32 = arith.constant 0 : i32
    return %arg0, %arg2 : i32, i32
  }
  func.func @transform_1(%arg0: i32, %arg1: i32, %arg2: i32) -> (i32, i32) {
    %c0_i32 = arith.constant 0 : i32
    return %arg2, %arg1 : i32, i32
  }
  func.func @transform_2(%arg0: i32, %arg1: i32, %arg2: i32) -> (i32, i32) {
    %c0_i32 = arith.constant 0 : i32
    %c0_i32_0 = arith.constant 0 : i32
    return %c0_i32, %arg1 : i32, i32
  }
  func.func @transform_3(%arg0: i32, %arg1: i32, %arg2: i32) -> (i32, i32) {
    %c0_i32 = arith.constant 0 : i32
    return %arg0, %arg1 : i32, i32
  }
}

module attributes {stable_mosaic.version = 11 : i64} {
  func.func @_linear_kernel(%arg0: i32, %arg1: i32, %arg2: i32, %arg3: memref<2x32xf32, #tpu.memory_space<vmem>>, %arg4: memref<32x32xf32, #tpu.memory_space<vmem>>, %arg5: memref<1x32xf32, #tpu.memory_space<vmem>>, %arg6: memref<2x32xf32, #tpu.memory_space<vmem>>, %arg7: memref<2x32xf32, #tpu.memory_space<vmem>>) attributes {dimension_semantics = [#tpu.dimension_semantics<parallel>, #tpu.dimension_semantics<parallel>, #tpu.dimension_semantics<arbitrary>], iteration_bounds = array<i64: 1, 1, 1>, scalar_prefetch = 0 : i64, scratch_operands = 1 : i64, tpu.core_type = #tpu.core_type<tc>, window_params = [{transform_indices = @transform_0, window_bounds = array<i64: 2, 32>}, {transform_indices = @transform_1, window_bounds = array<i64: 32, 32>}, {transform_indices = @transform_2, window_bounds = array<i64: 1, 32>}, {transform_indices = @transform_3, window_bounds = array<i64: 2, 32>}]} {
    %c0_i32 = arith.constant 0 : i32
    %0 = arith.cmpi eq, %arg2, %c0_i32 : i32
    %1 = arith.extui %0 : i1 to i32
    %c0_i32_0 = arith.constant 0 : i32
    %2 = arith.cmpi ne, %1, %c0_i32_0 : i32
    scf.if %2 {
      %cst_10 = arith.constant 0.000000e+00 : f32
      %12 = vector.broadcast %cst_10 : f32 to vector<2x32xf32>
      %c0_11 = arith.constant 0 : index
      %c0_12 = arith.constant 0 : index
      %13 = vector.load %arg7[%c0_11, %c0_12] : memref<2x32xf32, #tpu.memory_space<vmem>>, vector<2x32xf32>
      tpu.vector_store %arg7[%c0_11, %c0_12], %12 {strides = array<i32>} : memref<2x32xf32, #tpu.memory_space<vmem>>, vector<2x32xf32>,
    } else {
    }
    %c0 = arith.constant 0 : index
    %c0_1 = arith.constant 0 : index
    %3 = vector.load %arg7[%c0, %c0_1] : memref<2x32xf32, #tpu.memory_space<vmem>>, vector<2x32xf32>
    %c0_2 = arith.constant 0 : index
    %c0_3 = arith.constant 0 : index
    %4 = vector.load %arg3[%c0_2, %c0_3] : memref<2x32xf32, #tpu.memory_space<vmem>>, vector<2x32xf32>
    %c0_4 = arith.constant 0 : index
    %c0_5 = arith.constant 0 : index
    %5 = vector.load %arg4[%c0_4, %c0_5] : memref<32x32xf32, #tpu.memory_space<vmem>>, vector<32x32xf32>
    %cst = arith.constant dense<0.000000e+00> : vector<2x32xf32>
    %6 = tpu.matmul %4, %5, %cst {dimension_numbers = #tpu.dot_dimension_numbers<[1], [0], [0], [1], [0, 0, 1, 1], [], []>} : vector<2x32xf32>, vector<32x32xf32>, vector<2x32xf32> -> vector<2x32xf32>
    %7 = arith.addf %3, %6 : vector<2x32xf32>
    %c0_6 = arith.constant 0 : index
    %c0_7 = arith.constant 0 : index
    %8 = vector.load %arg7[%c0_6, %c0_7] : memref<2x32xf32, #tpu.memory_space<vmem>>, vector<2x32xf32>
    tpu.vector_store %arg7[%c0_6, %c0_7], %7 {strides = array<i32>} : memref<2x32xf32, #tpu.memory_space<vmem>>, vector<2x32xf32>,
    %c0_i32_8 = arith.constant 0 : i32
    %9 = arith.cmpi eq, %arg2, %c0_i32_8 : i32
    %10 = arith.extui %9 : i1 to i32
    %c0_i32_9 = arith.constant 0 : i32
    %11 = arith.cmpi ne, %10, %c0_i32_9 : i32
    scf.if %11 {
      %c0_10 = arith.constant 0 : index
      %c0_11 = arith.constant 0 : index
      %12 = vector.load %arg7[%c0_10, %c0_11] : memref<2x32xf32, #tpu.memory_space<vmem>>, vector<2x32xf32>
      %c0_12 = arith.constant 0 : index
      %c0_13 = arith.constant 0 : index
      %13 = vector.load %arg5[%c0_12, %c0_13] : memref<1x32xf32, #tpu.memory_space<vmem>>, vector<1x32xf32>
      %14 = vector.broadcast %13 : vector<1x32xf32> to vector<2x32xf32>
      %15 = arith.addf %12, %14 : vector<2x32xf32>
      %c0_14 = arith.constant 0 : index
      %c0_15 = arith.constant 0 : index
      %16 = vector.load %arg6[%c0_14, %c0_15] : memref<2x32xf32, #tpu.memory_space<vmem>>, vector<2x32xf32>
      tpu.vector_store %arg6[%c0_14, %c0_15], %15 {strides = array<i32>} : memref<2x32xf32, #tpu.memory_space<vmem>>, vector<2x32xf32>,
    } else {
    }
    return
  }
  func.func @transform_0(%arg0: i32, %arg1: i32, %arg2: i32) -> (i32, i32) {
    %c0_i32 = arith.constant 0 : i32
    return %arg0, %arg2 : i32, i32
  }
  func.func @transform_1(%arg0: i32, %arg1: i32, %arg2: i32) -> (i32, i32) {
    %c0_i32 = arith.constant 0 : i32
    return %arg2, %arg1 : i32, i32
  }
  func.func @transform_2(%arg0: i32, %arg1: i32, %arg2: i32) -> (i32, i32) {
    %c0_i32 = arith.constant 0 : i32
    %c0_i32_0 = arith.constant 0 : i32
    return %c0_i32, %arg1 : i32, i32
  }
  func.func @transform_3(%arg0: i32, %arg1: i32, %arg2: i32) -> (i32, i32) {
    %c0_i32 = arith.constant 0 : i32
    return %arg0, %arg1 : i32, i32
  }
}

module attributes {stable_mosaic.version = 11 : i64} {
  func.func @_linear_kernel(%arg0: i32, %arg1: i32, %arg2: i32, %arg3: memref<16x32xf32, #tpu.memory_space<vmem>>, %arg4: memref<32x64xf32, #tpu.memory_space<vmem>>, %arg5: memref<1x64xf32, #tpu.memory_space<vmem>>, %arg6: memref<16x64xf32, #tpu.memory_space<vmem>>, %arg7: memref<16x64xf32, #tpu.memory_space<vmem>>) attributes {dimension_semantics = [#tpu.dimension_semantics<parallel>, #tpu.dimension_semantics<parallel>, #tpu.dimension_semantics<arbitrary>], iteration_bounds = array<i64: 1, 1, 1>, scalar_prefetch = 0 : i64, scratch_operands = 1 : i64, tpu.core_type = #tpu.core_type<tc>, window_params = [{transform_indices = @transform_0, window_bounds = array<i64: 16, 32>}, {transform_indices = @transform_1, window_bounds = array<i64: 32, 64>}, {transform_indices = @transform_2, window_bounds = array<i64: 1, 64>}, {transform_indices = @transform_3, window_bounds = array<i64: 16, 64>}]} {
    %c0_i32 = arith.constant 0 : i32
    %0 = arith.cmpi eq, %arg2, %c0_i32 : i32
    %1 = arith.extui %0 : i1 to i32
    %c0_i32_0 = arith.constant 0 : i32
    %2 = arith.cmpi ne, %1, %c0_i32_0 : i32
    scf.if %2 {
      %cst_10 = arith.constant 0.000000e+00 : f32
      %12 = vector.broadcast %cst_10 : f32 to vector<16x64xf32>
      %c0_11 = arith.constant 0 : index
      %c0_12 = arith.constant 0 : index
      %13 = vector.load %arg7[%c0_11, %c0_12] : memref<16x64xf32, #tpu.memory_space<vmem>>, vector<16x64xf32>
      tpu.vector_store %arg7[%c0_11, %c0_12], %12 {strides = array<i32>} : memref<16x64xf32, #tpu.memory_space<vmem>>, vector<16x64xf32>,
    } else {
    }
    %c0 = arith.constant 0 : index
    %c0_1 = arith.constant 0 : index
    %3 = vector.load %arg7[%c0, %c0_1] : memref<16x64xf32, #tpu.memory_space<vmem>>, vector<16x64xf32>
    %c0_2 = arith.constant 0 : index
    %c0_3 = arith.constant 0 : index
    %4 = vector.load %arg3[%c0_2, %c0_3] : memref<16x32xf32, #tpu.memory_space<vmem>>, vector<16x32xf32>
    %c0_4 = arith.constant 0 : index
    %c0_5 = arith.constant 0 : index
    %5 = vector.load %arg4[%c0_4, %c0_5] : memref<32x64xf32, #tpu.memory_space<vmem>>, vector<32x64xf32>
    %cst = arith.constant dense<0.000000e+00> : vector<16x64xf32>
    %6 = tpu.matmul %4, %5, %cst {dimension_numbers = #tpu.dot_dimension_numbers<[1], [0], [0], [1], [0, 0, 1, 1], [], []>} : vector<16x32xf32>, vector<32x64xf32>, vector<16x64xf32> -> vector<16x64xf32>
    %7 = arith.addf %3, %6 : vector<16x64xf32>
    %c0_6 = arith.constant 0 : index
    %c0_7 = arith.constant 0 : index
    %8 = vector.load %arg7[%c0_6, %c0_7] : memref<16x64xf32, #tpu.memory_space<vmem>>, vector<16x64xf32>
    tpu.vector_store %arg7[%c0_6, %c0_7], %7 {strides = array<i32>} : memref<16x64xf32, #tpu.memory_space<vmem>>, vector<16x64xf32>,
    %c0_i32_8 = arith.constant 0 : i32
    %9 = arith.cmpi eq, %arg2, %c0_i32_8 : i32
    %10 = arith.extui %9 : i1 to i32
    %c0_i32_9 = arith.constant 0 : i32
    %11 = arith.cmpi ne, %10, %c0_i32_9 : i32
    scf.if %11 {
      %c0_10 = arith.constant 0 : index
      %c0_11 = arith.constant 0 : index
      %12 = vector.load %arg7[%c0_10, %c0_11] : memref<16x64xf32, #tpu.memory_space<vmem>>, vector<16x64xf32>
      %c0_12 = arith.constant 0 : index
      %c0_13 = arith.constant 0 : index
      %13 = vector.load %arg5[%c0_12, %c0_13] : memref<1x64xf32, #tpu.memory_space<vmem>>, vector<1x64xf32>
      %14 = vector.broadcast %13 : vector<1x64xf32> to vector<16x64xf32>
      %15 = arith.addf %12, %14 : vector<16x64xf32>
      %cst_14 = arith.constant 5.000000e-01 : f32
      %16 = vector.broadcast %cst_14 : f32 to vector<16x64xf32>
      %17 = arith.mulf %16, %15 : vector<16x64xf32>
      %cst_15 = arith.constant 0.707106769 : f32
      %18 = vector.broadcast %cst_15 : f32 to vector<16x64xf32>
      %19 = arith.mulf %15, %18 : vector<16x64xf32>
      %cst_16 = arith.constant 0.000000e+00 : f32
      %20 = vector.broadcast %cst_16 : f32 to vector<16x64xf32>
      %21 = arith.cmpf oge, %19, %20 : vector<16x64xf32>
      %cst_17 = arith.constant 1.000000e+00 : f32
      %cst_18 = arith.constant -1.000000e+00 : f32
      %22 = vector.broadcast %cst_17 : f32 to vector<16x64xf32>
      %23 = vector.broadcast %cst_18 : f32 to vector<16x64xf32>
      %24 = arith.select %21, %22, %23 : vector<16x64xi1>, vector<16x64xf32>
      %25 = math.absf %19 : vector<16x64xf32>
      %cst_19 = arith.constant 0.327591091 : f32
      %26 = vector.broadcast %cst_19 : f32 to vector<16x64xf32>
      %27 = arith.mulf %26, %25 : vector<16x64xf32>
      %cst_20 = arith.constant 1.000000e+00 : f32
      %28 = vector.broadcast %cst_20 : f32 to vector<16x64xf32>
      %29 = arith.addf %28, %27 : vector<16x64xf32>
      %cst_21 = arith.constant 1.000000e+00 : f32
      %30 = vector.broadcast %cst_21 : f32 to vector<16x64xf32>
      %31 = arith.divf %30, %29 : vector<16x64xf32>
      %cst_22 = arith.constant 1.06140542 : f32
      %32 = vector.broadcast %cst_22 : f32 to vector<16x64xf32>
      %33 = arith.mulf %32, %31 : vector<16x64xf32>
      %cst_23 = arith.constant -1.45315206 : f32
      %34 = vector.broadcast %cst_23 : f32 to vector<16x64xf32>
      %35 = arith.addf %33, %34 : vector<16x64xf32>
      %36 = arith.mulf %35, %31 : vector<16x64xf32>
      %cst_24 = arith.constant 1.42141378 : f32
      %37 = vector.broadcast %cst_24 : f32 to vector<16x64xf32>
      %38 = arith.addf %36, %37 : vector<16x64xf32>
      %39 = arith.mulf %38, %31 : vector<16x64xf32>
      %cst_25 = arith.constant -0.284496725 : f32
      %40 = vector.broadcast %cst_25 : f32 to vector<16x64xf32>
      %41 = arith.addf %39, %40 : vector<16x64xf32>
      %42 = arith.mulf %41, %31 : vector<16x64xf32>
      %cst_26 = arith.constant 0.254829586 : f32
      %43 = vector.broadcast %cst_26 : f32 to vector<16x64xf32>
      %44 = arith.addf %42, %43 : vector<16x64xf32>
      %45 = arith.mulf %44, %31 : vector<16x64xf32>
      %cst_27 = arith.constant 0.000000e+00 : f32
      %46 = vector.broadcast %cst_27 : f32 to vector<16x64xf32>
      %47 = arith.subf %46, %25 : vector<16x64xf32>
      %48 = arith.mulf %47, %25 : vector<16x64xf32>
      %49 = math.exp %48 : vector<16x64xf32>
      %50 = arith.mulf %45, %49 : vector<16x64xf32>
      %cst_28 = arith.constant 1.000000e+00 : f32
      %51 = vector.broadcast %cst_28 : f32 to vector<16x64xf32>
      %52 = arith.subf %51, %50 : vector<16x64xf32>
      %53 = arith.mulf %24, %52 : vector<16x64xf32>
      %cst_29 = arith.constant 1.000000e+00 : f32
      %54 = vector.broadcast %cst_29 : f32 to vector<16x64xf32>
      %55 = arith.addf %54, %53 : vector<16x64xf32>
      %56 = arith.mulf %17, %55 : vector<16x64xf32>
      %c0_30 = arith.constant 0 : index
      %c0_31 = arith.constant 0 : index
      %57 = vector.load %arg6[%c0_30, %c0_31] : memref<16x64xf32, #tpu.memory_space<vmem>>, vector<16x64xf32>
      tpu.vector_store %arg6[%c0_30, %c0_31], %56 {strides = array<i32>} : memref<16x64xf32, #tpu.memory_space<vmem>>, vector<16x64xf32>,
    } else {
    }
    return
  }
  func.func @transform_0(%arg0: i32, %arg1: i32, %arg2: i32) -> (i32, i32) {
    %c0_i32 = arith.constant 0 : i32
    return %arg0, %arg2 : i32, i32
  }
  func.func @transform_1(%arg0: i32, %arg1: i32, %arg2: i32) -> (i32, i32) {
    %c0_i32 = arith.constant 0 : i32
    return %arg2, %arg1 : i32, i32
  }
  func.func @transform_2(%arg0: i32, %arg1: i32, %arg2: i32) -> (i32, i32) {
    %c0_i32 = arith.constant 0 : i32
    %c0_i32_0 = arith.constant 0 : i32
    return %c0_i32, %arg1 : i32, i32
  }
  func.func @transform_3(%arg0: i32, %arg1: i32, %arg2: i32) -> (i32, i32) {
    %c0_i32 = arith.constant 0 : i32
    return %arg0, %arg1 : i32, i32
  }
}

module attributes {stable_mosaic.version = 11 : i64} {
  func.func @_ian_attend_kernel(%arg0: i32, %arg1: memref<1x8x32xf32, #tpu.memory_space<vmem>>, %arg2: memref<1x1x32xf32, #tpu.memory_space<vmem>>, %arg3: memref<1x1x32xf32, #tpu.memory_space<vmem>>) attributes {dimension_semantics = [#tpu.dimension_semantics<parallel>], iteration_bounds = array<i64: 2>, scalar_prefetch = 0 : i64, scratch_operands = 0 : i64, tpu.core_type = #tpu.core_type<tc>, window_params = [{transform_indices = @transform_0, window_bounds = array<i64: 1, 8, 32>}, {transform_indices = @transform_1, window_bounds = array<i64: 1, 1, 32>}, {transform_indices = @transform_2, window_bounds = array<i64: 1, 1, 32>}]} {
    %c0 = arith.constant 0 : index
    %c0_0 = arith.constant 0 : index
    %c0_1 = arith.constant 0 : index
    %0 = vector.load %arg1[%c0, %c0_0, %c0_1] : memref<1x8x32xf32, #tpu.memory_space<vmem>>, vector<1x8x32xf32>
    %1 = vector.shape_cast %0 : vector<1x8x32xf32> to vector<8x32xf32>
    %c0_2 = arith.constant 0 : index
    %c0_3 = arith.constant 0 : index
    %c0_4 = arith.constant 0 : index
    %2 = vector.load %arg2[%c0_2, %c0_3, %c0_4] : memref<1x1x32xf32, #tpu.memory_space<vmem>>, vector<1x1x32xf32>
    %3 = vector.shape_cast %2 : vector<1x1x32xf32> to vector<1x32xf32>
    %cst = arith.constant dense<0.000000e+00> : vector<1x8xf32>
    %4 = tpu.matmul %3, %1, %cst {dimension_numbers = #tpu.dot_dimension_numbers<[1], [1], [0], [0], [0, 0, 1, 0], [], []>} : vector<1x32xf32>, vector<8x32xf32>, vector<1x8xf32> -> vector<1x8xf32>
    %cst_5 = arith.constant dense<0xFF800000> : vector<1xf32>
    %5 = vector.multi_reduction <maximumf>, %4, %cst_5 [1] : vector<1x8xf32> to vector<1xf32>
    %6 = vector.shape_cast %5 : vector<1xf32> to vector<1x1xf32>
    %7 = vector.broadcast %6 : vector<1x1xf32> to vector<1x8xf32>
    %8 = arith.subf %4, %7 : vector<1x8xf32>
    %9 = math.exp %8 : vector<1x8xf32>
    %cst_6 = arith.constant dense<0.000000e+00> : vector<1xf32>
    %10 = vector.multi_reduction <add>, %9, %cst_6 [1] : vector<1x8xf32> to vector<1xf32>
    %11 = vector.shape_cast %10 : vector<1xf32> to vector<1x1xf32>
    %12 = tpu.reciprocal %11 {approx = true} : vector<1x1xf32> -> vector<1x1xf32>
    %13 = vector.broadcast %12 : vector<1x1xf32> to vector<1x8xf32>
    %14 = arith.mulf %9, %13 : vector<1x8xf32>
    %cst_7 = arith.constant dense<0.000000e+00> : vector<1x32xf32>
    %15 = tpu.matmul %14, %1, %cst_7 {dimension_numbers = #tpu.dot_dimension_numbers<[1], [0], [0], [1], [0, 0, 1, 1], [], []>} : vector<1x8xf32>, vector<8x32xf32>, vector<1x32xf32> -> vector<1x32xf32>
    %c0_8 = arith.constant 0 : index
    %c0_9 = arith.constant 0 : index
    %c0_10 = arith.constant 0 : index
    %16 = vector.load %arg3[%c0_8, %c0_9, %c0_10] : memref<1x1x32xf32, #tpu.memory_space<vmem>>, vector<1x1x32xf32>
    %17 = vector.shape_cast %16 : vector<1x1x32xf32> to vector<1x32xf32>
    %18 = vector.shape_cast %15 : vector<1x32xf32> to vector<1x1x32xf32>
    tpu.vector_store %arg3[%c0_8, %c0_9, %c0_10], %18 {strides = array<i32>} : memref<1x1x32xf32, #tpu.memory_space<vmem>>, vector<1x1x32xf32>,
    return
  }
  func.func @transform_0(%arg0: i32) -> (i32, i32, i32) {
    %c0_i32 = arith.constant 0 : i32
    %c0_i32_0 = arith.constant 0 : i32
    %c0_i32_1 = arith.constant 0 : i32
    return %arg0, %c0_i32, %c0_i32_0 : i32, i32, i32
  }
  func.func @transform_1(%arg0: i32) -> (i32, i32, i32) {
    %c0_i32 = arith.constant 0 : i32
    %c0_i32_0 = arith.constant 0 : i32
    %c0_i32_1 = arith.constant 0 : i32
    return %arg0, %c0_i32, %c0_i32_0 : i32, i32, i32
  }
  func.func @transform_2(%arg0: i32) -> (i32, i32, i32) {
    %c0_i32 = arith.constant 0 : i32
    %c0_i32_0 = arith.constant 0 : i32
    %c0_i32_1 = arith.constant 0 : i32
    return %arg0, %c0_i32, %c0_i32_0 : i32, i32, i32
  }
}

module attributes {stable_mosaic.version = 11 : i64} {
  func.func @_linear_kernel(%arg0: i32, %arg1: i32, %arg2: i32, %arg3: memref<2x64xf32, #tpu.memory_space<vmem>>, %arg4: memref<64x3xf32, #tpu.memory_space<vmem>>, %arg5: memref<1x3xf32, #tpu.memory_space<vmem>>, %arg6: memref<2x3xf32, #tpu.memory_space<vmem>>, %arg7: memref<2x3xf32, #tpu.memory_space<vmem>>) attributes {dimension_semantics = [#tpu.dimension_semantics<parallel>, #tpu.dimension_semantics<parallel>, #tpu.dimension_semantics<arbitrary>], iteration_bounds = array<i64: 1, 1, 1>, scalar_prefetch = 0 : i64, scratch_operands = 1 : i64, tpu.core_type = #tpu.core_type<tc>, window_params = [{transform_indices = @transform_0, window_bounds = array<i64: 2, 64>}, {transform_indices = @transform_1, window_bounds = array<i64: 64, 3>}, {transform_indices = @transform_2, window_bounds = array<i64: 1, 3>}, {transform_indices = @transform_3, window_bounds = array<i64: 2, 3>}]} {
    %c0_i32 = arith.constant 0 : i32
    %0 = arith.cmpi eq, %arg2, %c0_i32 : i32
    %1 = arith.extui %0 : i1 to i32
    %c0_i32_0 = arith.constant 0 : i32
    %2 = arith.cmpi ne, %1, %c0_i32_0 : i32
    scf.if %2 {
      %cst_10 = arith.constant 0.000000e+00 : f32
      %12 = vector.broadcast %cst_10 : f32 to vector<2x3xf32>
      %c0_11 = arith.constant 0 : index
      %c0_12 = arith.constant 0 : index
      %13 = vector.load %arg7[%c0_11, %c0_12] : memref<2x3xf32, #tpu.memory_space<vmem>>, vector<2x3xf32>
      tpu.vector_store %arg7[%c0_11, %c0_12], %12 {strides = array<i32>} : memref<2x3xf32, #tpu.memory_space<vmem>>, vector<2x3xf32>,
    } else {
    }
    %c0 = arith.constant 0 : index
    %c0_1 = arith.constant 0 : index
    %3 = vector.load %arg7[%c0, %c0_1] : memref<2x3xf32, #tpu.memory_space<vmem>>, vector<2x3xf32>
    %c0_2 = arith.constant 0 : index
    %c0_3 = arith.constant 0 : index
    %4 = vector.load %arg3[%c0_2, %c0_3] : memref<2x64xf32, #tpu.memory_space<vmem>>, vector<2x64xf32>
    %c0_4 = arith.constant 0 : index
    %c0_5 = arith.constant 0 : index
    %5 = vector.load %arg4[%c0_4, %c0_5] : memref<64x3xf32, #tpu.memory_space<vmem>>, vector<64x3xf32>
    %cst = arith.constant dense<0.000000e+00> : vector<2x3xf32>
    %6 = tpu.matmul %4, %5, %cst {dimension_numbers = #tpu.dot_dimension_numbers<[1], [0], [0], [1], [0, 0, 1, 1], [], []>} : vector<2x64xf32>, vector<64x3xf32>, vector<2x3xf32> -> vector<2x3xf32>
    %7 = arith.addf %3, %6 : vector<2x3xf32>
    %c0_6 = arith.constant 0 : index
    %c0_7 = arith.constant 0 : index
    %8 = vector.load %arg7[%c0_6, %c0_7] : memref<2x3xf32, #tpu.memory_space<vmem>>, vector<2x3xf32>
    tpu.vector_store %arg7[%c0_6, %c0_7], %7 {strides = array<i32>} : memref<2x3xf32, #tpu.memory_space<vmem>>, vector<2x3xf32>,
    %c0_i32_8 = arith.constant 0 : i32
    %9 = arith.cmpi eq, %arg2, %c0_i32_8 : i32
    %10 = arith.extui %9 : i1 to i32
    %c0_i32_9 = arith.constant 0 : i32
    %11 = arith.cmpi ne, %10, %c0_i32_9 : i32
    scf.if %11 {
      %c0_10 = arith.constant 0 : index
      %c0_11 = arith.constant 0 : index
      %12 = vector.load %arg7[%c0_10, %c0_11] : memref<2x3xf32, #tpu.memory_space<vmem>>, vector<2x3xf32>
      %c0_12 = arith.constant 0 : index
      %c0_13 = arith.constant 0 : index
      %13 = vector.load %arg5[%c0_12, %c0_13] : memref<1x3xf32, #tpu.memory_space<vmem>>, vector<1x3xf32>
      %14 = vector.broadcast %13 : vector<1x3xf32> to vector<2x3xf32>
      %15 = arith.addf %12, %14 : vector<2x3xf32>
      %c0_14 = arith.constant 0 : index
      %c0_15 = arith.constant 0 : index
      %16 = vector.load %arg6[%c0_14, %c0_15] : memref<2x3xf32, #tpu.memory_space<vmem>>, vector<2x3xf32>
      tpu.vector_store %arg6[%c0_14, %c0_15], %15 {strides = array<i32>} : memref<2x3xf32, #tpu.memory_space<vmem>>, vector<2x3xf32>,
    } else {
    }
    return
  }
  func.func @transform_0(%arg0: i32, %arg1: i32, %arg2: i32) -> (i32, i32) {
    %c0_i32 = arith.constant 0 : i32
    return %arg0, %arg2 : i32, i32
  }
  func.func @transform_1(%arg0: i32, %arg1: i32, %arg2: i32) -> (i32, i32) {
    %c0_i32 = arith.constant 0 : i32
    return %arg2, %arg1 : i32, i32
  }
  func.func @transform_2(%arg0: i32, %arg1: i32, %arg2: i32) -> (i32, i32) {
    %c0_i32 = arith.constant 0 : i32
    %c0_i32_0 = arith.constant 0 : i32
    return %c0_i32, %arg1 : i32, i32
  }
  func.func @transform_3(%arg0: i32, %arg1: i32, %arg2: i32) -> (i32, i32) {
    %c0_i32 = arith.constant 0 : i32
    return %arg0, %arg1 : i32, i32
  }
}

</mosaic_0001>

<bundles_post_ra>
// kernel: bert_ian_forward.56
= control target key start
LH: loop header
LB: loop body
LE: loop exit
PB: predicated region body
PF: predicated region fallthrough
CT: control target
= control target key end

     0   :  { %vm16_vm0 = vcmask 261120   ;;  %v95_v4 = vmov 32.0   ;;  %s140_s0 = inlined_call_operand.vmem [shape: f32[16,32], index: 0, kind: input, shape index: {}]   ;;  %s141_s1 = inlined_call_operand.vmem [shape: f32[1,32], index: 1, kind: input, shape index: {}]   ;;  %s142_s2 = inlined_call_operand.vmem [shape: f32[1,32], index: 2, kind: input, shape index: {}]   ;;  %s143_s3 = inlined_call_operand.vmem [shape: f32[16,32], index: 3, kind: output, shape index: {}]  }
   0x1   :  { %v14_v0 = vld [vmem:[%s140_s0] sm:$0xff]  ;;  %v15_v2 = vld [vmem:[%s140_s0 + $0x8] sm:$0xff]  ;;  %89 = vrcp.f32 %v95_v4 }
   0x2   :  { %v17_v1 = vsel %vm16_vm0, %v14_v0, 0.0  ;;  %v20_v3 = vsel %vm16_vm0, %v15_v2, 0.0  ;;  %v87_v35 = vld [vmem:[%s141_s1] ss:$0 sm:$0xff] }
   0x3   :  { %18 = vadd.xlane.f32.xlu0 %v17_v1  ;;  %v88_v38 = vld [vmem:[%s142_s2] ss:$0 sm:$0xff] }
   0x7   :  { %v90_v5 = vpop.eup %89 }
   0x8   :  { %v24_v6 = vmul.f32 32.0, %v90_v5  ;;  %vm28_vm1 = vweird.f32 %v90_v5 }
   0xa   :  { %v25_v7 = vsub.f32 1.0, %v24_v6 }
   0xb   :  { %21 = vadd.xlane.f32.xlu0 %v20_v3 }
   0xc   :  { %v26_v8 = vmul.f32 %v90_v5, %v25_v7 }
   0xe   :  { %v27_v9 = vadd.f32 %v90_v5, %v26_v8 }
  0x10   :  { %v29_v10 = vsel %vm28_vm1, %v90_v5, %v27_v9 }
  0x76   :  { %v19_v11 = vpop.xlane.xlu0 %18 }
  0x77   :  { %v30_v12 = vmul.f32 %v29_v10, %v19_v11 }
  0x79   :  { %v32_v13 = vsub.f32 %v14_v0, %v30_v12 }
  0x7b   :  { %v34_v14 = vmul.f32 %v32_v13, %v32_v13 }
  0x7d   :  { %v36_v15 = vsel %vm16_vm0, %v34_v14, 0.0 }
  0x7e   :  { %37 = vadd.xlane.f32.xlu1 %v36_v15  ;;  %v22_v16 = vpop.xlane.xlu0 %21 }
  0x7f   :  { %v31_v17 = vmul.f32 %v29_v10, %v22_v16 }
  0x81   :  { %v33_v18 = vsub.f32 %v15_v2, %v31_v17 }
  0x83   :  { %v35_v19 = vmul.f32 %v33_v18, %v33_v18 }
  0x85   :  { %v39_v20 = vsel %vm16_vm0, %v35_v19, 0.0 }
  0x86   :  { %40 = vadd.xlane.f32.xlu1 %v39_v20 }
  0xf1   :  { %v38_v21 = vpop.xlane.xlu1 %37 }
  0xf2   :  { %v42_v22 = vmul.f32 %v38_v21, %v29_v10 }
  0xf4   :  { %v44_v23 = vadd.f32 1e-12, %v42_v22 }
  0xf6   :  { %91 = vrsqrt.f32 %v44_v23  ;;  %vm52_vm3 = vweird.f32 %v44_v23 }
  0xf9   :  { %v41_v24 = vpop.xlane.xlu1 %40 }
  0xfa   :  { %v43_v25 = vmul.f32 %v41_v24, %v29_v10 }
  0xfc   :  { %v92_v26 = vpop.eup %91  ;;  %v45_v27 = vadd.f32 1e-12, %v43_v25 }
  0xfd   :  { %v47_v28 = vmul.f32 %v92_v26, %v44_v23  ;;  %vm53_vm2 = vweird.f32 %v92_v26 }
  0xfe   :  { %93 = vrsqrt.f32 %v45_v27  ;;  %vm54_vm4 = vmor %vm52_vm3, %vm53_vm2  ;;  %vm62_vm6 = vweird.f32 %v45_v27 }
  0xff   :  { %v48_v29 = vmul.f32 %v92_v26, %v47_v28 }
 0x101   :  { %v49_v30 = vmul.f32 0.5, %v48_v29 }
 0x103   :  { %v50_v31 = vsub.f32 1.5, %v49_v30 }
 0x104   :  { %v94_v32 = vpop.eup %93 }
 0x105   :  { %v51_v33 = vmul.f32 %v92_v26, %v50_v31  ;;  %v57_v34 = vmul.f32 %v94_v32, %v45_v27  ;;  %vm63_vm5 = vweird.f32 %v94_v32 }
 0x106   :  { %vm64_vm7 = vmor %vm62_vm6, %vm63_vm5 }
 0x107   :  { %v55_v36 = vsel %vm54_vm4, %v92_v26, %v51_v33  ;;  %v58_v37 = vmul.f32 %v94_v32, %v57_v34 }
 0x108   :  { %v66_v39 = vmul.f32 %v55_v36, %v32_v13 }
 0x109   :  { %v59_v40 = vmul.f32 0.5, %v58_v37 }
 0x10a   :  { %v72_v41 = vmul.f32 %v87_v35, %v66_v39 }
 0x10b   :  { %v60_v42 = vsub.f32 1.5, %v59_v40 }
 0x10c   :  { %v78_v43 = vadd.f32 %v88_v38, %v72_v41 }
 0x10d   :  { %v61_v44 = vmul.f32 %v94_v32, %v60_v42 }
 0x10e   :  { %80 = vst.msk [vmem:[%s143_s3] sm:$0xff] %vm16_vm0, %v78_v43 }
 0x10f   :  { %v65_v45 = vsel %vm64_vm7, %v94_v32, %v61_v44 }
 0x110   :  { %v67_v46 = vmul.f32 %v65_v45, %v33_v18 }
 0x112   :  { %v73_v47 = vmul.f32 %v87_v35, %v67_v46 }
 0x114   :  { %v79_v48 = vadd.f32 %v88_v38, %v73_v47 }
 0x116   :  { %81 = vst.msk [vmem:[%s143_s3 + $0x8] sm:$0xff] %vm16_vm0, %v79_v48 }

// kernel: bert_ian_forward.43
= control target key start
LH: loop header
LB: loop body
LE: loop exit
PB: predicated region body
PF: predicated region fallthrough
CT: control target
= control target key end

     0   :  { %s427_s9 = smov 0   ;;  %s466_s0 = inlined_call_operand.vmem [shape: f32[2,8,96], index: 0, kind: input, shape index: {}]   ;;  %s467_s1 = inlined_call_operand.vmem [shape: f32[2,1,8], index: 1, kind: input, shape index: {}]   ;;  %s468_s2 = inlined_call_operand.vmem [shape: f32[2,8,32], index: 2, kind: output, shape index: {}]  }
   0x1 LB: > { %s360_s10 = sadd.s32 4294967295, %s404_s9   ;;  %p364_p0 = scmp.ge.s32.totalorder %s404_s9, 1  ;;  %s404_s9 = sphi %s427_s9, %s12_s9  }
   0x2   : > { %p119_p1 = scmp.lt.s32.totalorder %s404_s9, 3 }
   0x4   : > { %p120_p2 = pnand %p364_p0, %p119_p1 }
   0x5   : > { %p142_p3 = scmp.lt.s32.totalorder (!%p120_p2), %s360_s10, 1  ;;  %s406_s18 = smov (!%p120_p2), 96  }
   0x6   : > { %123 = sbr.rel (%p120_p2) target bundleno = 751 (0x2ef), region = 28  ;;  %s407_s19 = smov (!%p120_p2), 80  }
   0x7   : > { %s408_s20 = smov (!%p120_p2), 112   ;;  %s409_s21 = smov (!%p120_p2), 48  }
   0x8   : > { %s410_s22 = smov (!%p120_p2), 64   ;;  %s411_s23 = smov (!%p120_p2), 16  }
   0xb   : > { %s470_s10 = smov (!%p142_p3, %s360_s10), 1  ;;  %vm162_vm0 = vcmask 130048   ;;  %vm188_vm1 = vcmask 64512   ;;  %vm296_vm2 = vcmask 261120  }
   0xc   : > { %s365_s11 = sshll.u32 %s470_s10, 3  ;;  %s148_s14 = scalar_lea.vmem %s467_s1, %s470_s10 }
   0xd   : > { %s145_s17 = scalar_lea.vmem %s466_s0, %s365_s11  ;;  %v389_v5 = vld [vmem:[%s148_s14] ss:$0 sm:$0xff]  ;;  %s152_s26 = scalar_lea.vmem %s468_s2, %s365_s11 }
   0xe   : > { %v153_v0 = vld [vmem:[%s145_s17] sm:$0xff] }
   0xf   : > { %160 = vrot.lane.b32.xlu1 %v153_v0, %s406_s18  ;;  %228 = vrot.lane.b32.xlu0 %v153_v0, %s407_s19  ;;  %v155_v1 = vmul.f32 0.25, %v153_v0 }
  0x17   : > { %226 = vrot.lane.b32.xlu0 %v155_v1, %s408_s20 }
  0x1f   : > { %265 = vrot.lane.b32.xlu0 %v153_v0, %s409_s21 }
  0x27   : > { %200 = vrot.lane.b32.xlu0 %v153_v0, %s410_s22 }
  0x81   : > { %v161_v2 = vpop.permute.xlu1 %160  ;;  %v229_v3 = vpop.permute.xlu0 %228 }
  0x82   : > { %367 = vmatpush.xpose.msk.msra.mxu0 %vm162_vm0, %v161_v2  ;;  %370 = vmatpush.xpose.msk.msra.mxu2 %vm162_vm0, %v229_v3 }
  0x85   : > { %368 = vmatmul.msk.f32.vlgmr.msra.gmra.mxu0 %vm162_vm0, %v155_v1 }
  0x89   : > { %v227_v4 = vpop.permute.xlu0 %226 }
  0x8a   : > { %371 = vmatmul.msk.f32.vlgmr.msra.gmra.mxu2 %vm162_vm0, %v227_v4 }
  0x91   : > { %v266_v22 = vpop.permute.xlu0 %265 }
  0x92   : > { %286 = vmatpush.msra.mxu3 %v266_v22 }
  0x99   : > { %v201_v23 = vpop.permute.xlu0 %200 }
  0x9a   : > { %221 = vmatpush.msra.mxu1 %v201_v23 }
 0x102   : > { %v185_v6 = vpop.f32.mrf.mxu0 }
 0x103   : > { %v186_v7 = vadd.f32 %v389_v5, %v185_v6 }
 0x105   : > { %v189_v8 = vsel %vm188_vm1, %v186_v7, -inf }
 0x106   : > { %190 = vmax.xlane.f32.xlu2 %v189_v8 }
 0x10d   : > { %v251_v9 = vpop.f32.mrf.mxu2 }
 0x10e   : > { %v252_v10 = vadd.f32 %v389_v5, %v251_v9 }
 0x110   : > { %v254_v11 = vsel %vm188_vm1, %v252_v10, -inf }
 0x111   : > { %255 = vmax.xlane.f32.xlu1 %v254_v11 }
 0x179   : > { %v191_v12 = vpop.xlane.xlu2 %190 }
 0x17a   : > { %v192_v15 = vsub.f32 %v186_v7, %v191_v12 }
 0x17c   : > { %v193_v17 = vmul.f32 1.442695, %v192_v15 }
 0x184   : > { %v256_v13 = vpop.xlane.xlu1 %255 }
 0x185   : > { %v257_v14 = vsub.f32 %v252_v10, %v256_v13 }
 0x187   : > { %v258_v16 = vmul.f32 1.442695, %v257_v14 }
 0x189   : > { %390 = vpow2.f32 %v258_v16 }
 0x18a   : > { %392 = vpow2.f32 %v193_v17 }
 0x18f   : > { %v391_v18 = vpop.eup %390 }
 0x190   : > { %v260_v19 = vsel %vm188_vm1, %v391_v18, 0.0  ;;  %v393_v20 = vpop.eup %392 }
 0x191   : > { %261 = vadd.xlane.f32.xlu2 %v260_v19  ;;  %v195_v21 = vsel %vm188_vm1, %v393_v20, 0.0 }
 0x199   : > { %196 = vadd.xlane.f32.xlu2 %v195_v21 }
 0x204   : > { %v262_v24 = vpop.xlane.xlu2 %261 }
 0x205   : > { %394 = vrcp.f32 %v262_v24 }
 0x20b   : > { %v395_v25 = vpop.eup %394 }
 0x20c   : > { %v197_v26 = vpop.xlane.xlu2 %196  ;;  %v264_v27 = vmul.f32 %v395_v25, %v391_v18 }
 0x20d   : > { %396 = vrcp.f32 %v197_v26 }
 0x20e   : > { %372 = vmatmul.msk.f32.vlgmr.msra.gmra.mxu3 %vm188_vm1, %v264_v27 }
 0x213   : > { %v397_v28 = vpop.eup %396 }
 0x214   : > { %v199_v29 = vmul.f32 %v397_v28, %v393_v20 }
 0x216   : > { %369 = vmatmul.msk.f32.vlgmr.msra.gmra.mxu1 %vm188_vm1, %v199_v29 }
 0x291   : > { %v288_v30 = vpop.f32.mrf.mxu3 }
 0x292   : > { %292 = vrot.lane.b32.xlu2 %v288_v30, %s411_s23 }
 0x293   : > { %v223_v31 = vpop.f32.mrf.mxu1 }
 0x2ec   : > { %v293_v32 = vpop.permute.xlu2 %292 }
 0x2ed   : > { %v295_v33 = vsel %vm162_vm0, %v223_v31, %v293_v32 }
 0x2ee   : > { %297 = vst.msk [vmem:[%s152_s26] sm:$0xff] %vm296_vm2, %v295_v33 }
 0x2ef PF: > { %s12_s9 = sadd.s32 1, %s404_s9  }
 0x2f0   : > { %p9_p4 = scmp.ge.s32.totalorder %s12_s9, 4  }
 0x2f2   :  { %11 = sbr.rel (!%p9_p4) target bundleno = 1 (0x1), region = 61 }

// kernel: bert_ian_forward.42
= control target key start
LH: loop header
LB: loop body
LE: loop exit
PB: predicated region body
PF: predicated region fallthrough
CT: control target
= control target key end

     0   :  { %vm18_vm0 = vcmask 785408   ;;  %v89_v2 = vmov 0.0   ;;  %vm29_vm1 = vcmask 261120   ;;  %s143_s1 = inlined_call_operand.vmem [shape: f32[32,96], index: 1, kind: input, shape index: {}]   ;;  %s144_s2 = inlined_call_operand.vmem [shape: f32[1,96], index: 2, kind: input, shape index: {}]   ;;  %s145_s0 = inlined_call_operand.vmem [shape: f32[16,32], index: 0, kind: input, shape index: {}]   ;;  %s146_s3 = inlined_call_operand.vmem [shape: f32[16,96], index: 3, kind: output, shape index: {}]  }
   0x1   :  { %v28_v0 = vld [vmem:[%s143_s1 + $0x18] sm:$0xff]  ;;  %v27_v1 = vld [vmem:[%s143_s1 + $0x10] sm:$0xff]  ;;  %19 = vst.msk [vmem:[#allocation2] sm:$0xff] %vm18_vm0, %v89_v2  ;;  %v26_v3 = vld [vmem:[%s143_s1 + $0x8] sm:$0xff] }
   0x2   :  { %48 = vmatpush.msra.mxu0 %v28_v0  ;;  %83 = vmatpush.msra.mxu1 %v28_v0  ;;  %20 = vst.msk [vmem:[#allocation2 + $0x8] sm:$0xff] %vm18_vm0, %v89_v2  ;;  %v25_v4 = vld [vmem:[%s143_s1] sm:$0xff]  ;;  %v24_v6 = vld [vmem:[%s145_s0 + $0x8] sm:$0xff] }
   0x3   :  { %v23_v5 = vld [vmem:[%s145_s0] sm:$0xff] }
   0x4   :  { %49 = vmatpush.msra.mxu0 %v27_v1  ;;  %84 = vmatpush.msra.mxu1 %v27_v1  ;;  %v88_v13 = vld [vmem:[%s144_s2] ss:$0 sm:$0xff] }
   0x6   :  { %50 = vmatpush.msra.mxu0 %v26_v3  ;;  %85 = vmatpush.msra.mxu1 %v26_v3 }
   0x8   :  { %51 = vmatpush.msra.mxu0 %v25_v4  ;;  %86 = vmatpush.msra.mxu1 %v25_v4  ;;  %v21_v7 = vld [vmem:[#allocation2] sm:$0xff] }
   0x9   :  { %81 = vmatmul.msk.f32.vlgmr.msra.gmra.mxu0 %vm29_vm1, %v23_v5  ;;  %82 = vmatmul.msk.f32.vlgmr.msra.gmra.mxu1 %vm29_vm1, %v24_v6  ;;  %v22_v8 = vld [vmem:[#allocation2 + $0x8] sm:$0xff] }
  0x86   :  { %v53_v9 = vpop.f32.mrf.mxu0  ;;  %v56_v10 = vpop.f32.mrf.mxu1 }
  0x87   :  { %v59_v11 = vadd.f32 %v53_v9, %v21_v7  ;;  %v60_v12 = vadd.f32 %v56_v10, %v22_v8 }
  0x89   :  { %62 = vst.msk [vmem:[#allocation2] sm:$0xff] %vm18_vm0, %v59_v11 }
  0x8a   :  { %63 = vst.msk [vmem:[#allocation2 + $0x8] sm:$0xff] %vm18_vm0, %v60_v12 }
  0x90   :  { %v67_v14 = vld [vmem:[#allocation2] sm:$0xff] }
  0x91   :  { %v73_v15 = vadd.f32 %v88_v13, %v67_v14  ;;  %v68_v16 = vld [vmem:[#allocation2 + $0x8] sm:$0xff] }
  0x92   :  { %v74_v17 = vadd.f32 %v88_v13, %v68_v16 }
  0x93   :  { %75 = vst.msk [vmem:[%s146_s3] sm:$0xff] %vm18_vm0, %v73_v15 }
  0x94   :  { %76 = vst.msk [vmem:[%s146_s3 + $0x8] sm:$0xff] %vm18_vm0, %v74_v17 }

// kernel: bert_ian_forward.44
= control target key start
LH: loop header
LB: loop body
LE: loop exit
PB: predicated region body
PF: predicated region fallthrough
CT: control target
= control target key end

     0   :  { %vm18_vm0 = vcmask 261120   ;;  %v88_v2 = vmov 0.0   ;;  %s144_s1 = inlined_call_operand.vmem [shape: f32[32,32], index: 1, kind: input, shape index: {}]   ;;  %s145_s2 = inlined_call_operand.vmem [shape: f32[1,32], index: 2, kind: input, shape index: {}]   ;;  %s146_s0 = inlined_call_operand.vmem [shape: f32[16,32], index: 0, kind: input, shape index: {}]   ;;  %s147_s3 = inlined_call_operand.vmem [shape: f32[16,32], index: 3, kind: output, shape index: {}]  }
   0x1   :  { %v28_v0 = vld [vmem:[%s144_s1 + $0x18] sm:$0xff]  ;;  %v27_v1 = vld [vmem:[%s144_s1 + $0x10] sm:$0xff]  ;;  %19 = vst.msk [vmem:[#allocation2] sm:$0xff] %vm18_vm0, %v88_v2  ;;  %v26_v3 = vld [vmem:[%s144_s1 + $0x8] sm:$0xff] }
   0x2   :  { %48 = vmatpush.msra.mxu0 %v28_v0  ;;  %82 = vmatpush.msra.mxu1 %v28_v0  ;;  %20 = vst.msk [vmem:[#allocation2 + $0x8] sm:$0xff] %vm18_vm0, %v88_v2  ;;  %v25_v4 = vld [vmem:[%s144_s1] sm:$0xff]  ;;  %v24_v6 = vld [vmem:[%s146_s0 + $0x8] sm:$0xff] }
   0x3   :  { %v23_v5 = vld [vmem:[%s146_s0] sm:$0xff] }
   0x4   :  { %49 = vmatpush.msra.mxu0 %v27_v1  ;;  %83 = vmatpush.msra.mxu1 %v27_v1  ;;  %v87_v13 = vld [vmem:[%s145_s2] ss:$0 sm:$0xff] }
   0x6   :  { %50 = vmatpush.msra.mxu0 %v26_v3  ;;  %84 = vmatpush.msra.mxu1 %v26_v3 }
   0x8   :  { %51 = vmatpush.msra.mxu0 %v25_v4  ;;  %85 = vmatpush.msra.mxu1 %v25_v4  ;;  %v21_v7 = vld [vmem:[#allocation2] sm:$0xff] }
   0x9   :  { %80 = vmatmul.msk.f32.vlgmr.msra.gmra.mxu0 %vm18_vm0, %v23_v5  ;;  %81 = vmatmul.msk.f32.vlgmr.msra.gmra.mxu1 %vm18_vm0, %v24_v6  ;;  %v22_v8 = vld [vmem:[#allocation2 + $0x8] sm:$0xff] }
  0x86   :  { %v53_v9 = vpop.f32.mrf.mxu0  ;;  %v56_v10 = vpop.f32.mrf.mxu1 }
  0x87   :  { %v59_v11 = vadd.f32 %v53_v9, %v21_v7  ;;  %v60_v12 = vadd.f32 %v56_v10, %v22_v8 }
  0x89   :  { %61 = vst.msk [vmem:[#allocation2] sm:$0xff] %vm18_vm0, %v59_v11 }
  0x8a   :  { %62 = vst.msk [vmem:[#allocation2 + $0x8] sm:$0xff] %vm18_vm0, %v60_v12 }
  0x90   :  { %v66_v14 = vld [vmem:[#allocation2] sm:$0xff] }
  0x91   :  { %v72_v15 = vadd.f32 %v87_v13, %v66_v14  ;;  %v67_v16 = vld [vmem:[#allocation2 + $0x8] sm:$0xff] }
  0x92   :  { %v73_v17 = vadd.f32 %v87_v13, %v67_v16 }
  0x93   :  { %74 = vst.msk [vmem:[%s147_s3] sm:$0xff] %vm18_vm0, %v72_v15 }
  0x94   :  { %75 = vst.msk [vmem:[%s147_s3 + $0x8] sm:$0xff] %vm18_vm0, %v73_v17 }

// kernel: bert_ian_forward.45
= control target key start
LH: loop header
LB: loop body
LE: loop exit
PB: predicated region body
PF: predicated region fallthrough
CT: control target
= control target key end

     0   :  { %vm23_vm0 = vcmask 261120   ;;  %v102_v8 = vmov 32.0   ;;  %s158_s0 = inlined_call_operand.vmem [shape: f32[16,32], index: 0, kind: input, shape index: {}]   ;;  %s159_s1 = inlined_call_operand.vmem [shape: f32[16,32], index: 1, kind: input, shape index: {}]   ;;  %s160_s2 = inlined_call_operand.vmem [shape: f32[1,32], index: 2, kind: input, shape index: {}]   ;;  %s161_s3 = inlined_call_operand.vmem [shape: f32[1,32], index: 3, kind: input, shape index: {}]   ;;  %s162_s4 = inlined_call_operand.vmem [shape: f32[16,32], index: 4, kind: output, shape index: {}]  }
   0x1   :  { %v17_v0 = vld [vmem:[%s158_s0] sm:$0xff]  ;;  %v18_v3 = vld [vmem:[%s158_s0 + $0x8] sm:$0xff]  ;;  %96 = vrcp.f32 %v102_v8 }
   0x2   :  { %v19_v1 = vld [vmem:[%s159_s1] sm:$0xff]  ;;  %v20_v4 = vld [vmem:[%s159_s1 + $0x8] sm:$0xff] }
   0x3   :  { %v21_v2 = vadd.f32 %v19_v1, %v17_v0  ;;  %v22_v6 = vadd.f32 %v20_v4, %v18_v3  ;;  %v94_v39 = vld [vmem:[%s160_s2] ss:$0 sm:$0xff] }
   0x4   :  { %v95_v42 = vld [vmem:[%s161_s3] ss:$0 sm:$0xff] }
   0x5   :  { %v24_v5 = vsel %vm23_vm0, %v21_v2, 0.0  ;;  %v27_v7 = vsel %vm23_vm0, %v22_v6, 0.0 }
   0x6   :  { %25 = vadd.xlane.f32.xlu0 %v24_v5 }
   0x7   :  { %v97_v9 = vpop.eup %96 }
   0x8   :  { %v31_v10 = vmul.f32 32.0, %v97_v9  ;;  %vm35_vm1 = vweird.f32 %v97_v9 }
   0xa   :  { %v32_v11 = vsub.f32 1.0, %v31_v10 }
   0xc   :  { %v33_v12 = vmul.f32 %v97_v9, %v32_v11 }
   0xe   :  { %28 = vadd.xlane.f32.xlu0 %v27_v7  ;;  %v34_v13 = vadd.f32 %v97_v9, %v33_v12 }
  0x10   :  { %v36_v14 = vsel %vm35_vm1, %v97_v9, %v34_v13 }
  0x79   :  { %v26_v15 = vpop.xlane.xlu0 %25 }
  0x7a   :  { %v37_v16 = vmul.f32 %v36_v14, %v26_v15 }
  0x7c   :  { %v39_v17 = vsub.f32 %v21_v2, %v37_v16 }
  0x7e   :  { %v41_v18 = vmul.f32 %v39_v17, %v39_v17 }
  0x80   :  { %v43_v19 = vsel %vm23_vm0, %v41_v18, 0.0 }
  0x81   :  { %44 = vadd.xlane.f32.xlu1 %v43_v19  ;;  %v29_v20 = vpop.xlane.xlu0 %28 }
  0x82   :  { %v38_v21 = vmul.f32 %v36_v14, %v29_v20 }
  0x84   :  { %v40_v22 = vsub.f32 %v22_v6, %v38_v21 }
  0x86   :  { %v42_v23 = vmul.f32 %v40_v22, %v40_v22 }
  0x88   :  { %v46_v24 = vsel %vm23_vm0, %v42_v23, 0.0 }
  0x89   :  { %47 = vadd.xlane.f32.xlu1 %v46_v24 }
  0xf4   :  { %v45_v25 = vpop.xlane.xlu1 %44 }
  0xf5   :  { %v49_v26 = vmul.f32 %v45_v25, %v36_v14 }
  0xf7   :  { %v51_v27 = vadd.f32 1e-12, %v49_v26 }
  0xf9   :  { %98 = vrsqrt.f32 %v51_v27  ;;  %vm59_vm3 = vweird.f32 %v51_v27 }
  0xfc   :  { %v48_v28 = vpop.xlane.xlu1 %47 }
  0xfd   :  { %v50_v29 = vmul.f32 %v48_v28, %v36_v14 }
  0xff   :  { %v99_v30 = vpop.eup %98  ;;  %v52_v31 = vadd.f32 1e-12, %v50_v29 }
 0x100   :  { %v54_v32 = vmul.f32 %v99_v30, %v51_v27  ;;  %vm60_vm2 = vweird.f32 %v99_v30 }
 0x101   :  { %100 = vrsqrt.f32 %v52_v31  ;;  %vm61_vm4 = vmor %vm59_vm3, %vm60_vm2  ;;  %vm69_vm6 = vweird.f32 %v52_v31 }
 0x102   :  { %v55_v33 = vmul.f32 %v99_v30, %v54_v32 }
 0x104   :  { %v56_v34 = vmul.f32 0.5, %v55_v33 }
 0x106   :  { %v57_v35 = vsub.f32 1.5, %v56_v34 }
 0x107   :  { %v101_v36 = vpop.eup %100 }
 0x108   :  { %v58_v37 = vmul.f32 %v99_v30, %v57_v35  ;;  %v64_v38 = vmul.f32 %v101_v36, %v52_v31  ;;  %vm70_vm5 = vweird.f32 %v101_v36 }
 0x109   :  { %vm71_vm7 = vmor %vm69_vm6, %vm70_vm5 }
 0x10a   :  { %v62_v40 = vsel %vm61_vm4, %v99_v30, %v58_v37  ;;  %v65_v41 = vmul.f32 %v101_v36, %v64_v38 }
 0x10b   :  { %v73_v43 = vmul.f32 %v62_v40, %v39_v17 }
 0x10c   :  { %v66_v44 = vmul.f32 0.5, %v65_v41 }
 0x10d   :  { %v79_v45 = vmul.f32 %v94_v39, %v73_v43 }
 0x10e   :  { %v67_v46 = vsub.f32 1.5, %v66_v44 }
 0x10f   :  { %v85_v47 = vadd.f32 %v95_v42, %v79_v45 }
 0x110   :  { %v68_v48 = vmul.f32 %v101_v36, %v67_v46 }
 0x111   :  { %87 = vst.msk [vmem:[%s162_s4] sm:$0xff] %vm23_vm0, %v85_v47 }
 0x112   :  { %v72_v49 = vsel %vm71_vm7, %v101_v36, %v68_v48 }
 0x113   :  { %v74_v50 = vmul.f32 %v72_v49, %v40_v22 }
 0x115   :  { %v80_v51 = vmul.f32 %v94_v39, %v74_v50 }
 0x117   :  { %v86_v52 = vadd.f32 %v95_v42, %v80_v51 }
 0x119   :  { %88 = vst.msk [vmem:[%s162_s4 + $0x8] sm:$0xff] %vm23_vm0, %v86_v52 }

// kernel: bert_ian_forward.47
= control target key start
LH: loop header
LB: loop body
LE: loop exit
PB: predicated region body
PF: predicated region fallthrough
CT: control target
= control target key end

     0   :  { %vm18_vm0 = vcmask 261120   ;;  %v97_v2 = vmov 0.0   ;;  %vm33_vm1 = vcmask 523264   ;;  %s163_s1 = inlined_call_operand.vmem [shape: f32[64,32], index: 1, kind: input, shape index: {}]   ;;  %s164_s2 = inlined_call_operand.vmem [shape: f32[1,32], index: 2, kind: input, shape index: {}]   ;;  %s165_s0 = inlined_call_operand.vmem [shape: f32[16,64], index: 0, kind: input, shape index: {}]   ;;  %s166_s3 = inlined_call_operand.vmem [shape: f32[16,32], index: 3, kind: output, shape index: {}]  }
   0x1   :  { %v32_v0 = vld [vmem:[%s163_s1 + $0x38] sm:$0xff]  ;;  %v31_v1 = vld [vmem:[%s163_s1 + $0x30] sm:$0xff]  ;;  %19 = vst.msk [vmem:[#allocation2] sm:$0xff] %vm18_vm0, %v97_v2  ;;  %v30_v3 = vld [vmem:[%s163_s1 + $0x28] sm:$0xff] }
   0x2   :  { %48 = vmatpush.msra.mxu0 %v32_v0  ;;  %87 = vmatpush.msra.mxu1 %v32_v0  ;;  %20 = vst.msk [vmem:[#allocation2 + $0x8] sm:$0xff] %vm18_vm0, %v97_v2  ;;  %v29_v4 = vld [vmem:[%s163_s1 + $0x20] sm:$0xff]  ;;  %v28_v5 = vld [vmem:[%s163_s1 + $0x18] sm:$0xff]  ;;  %v27_v6 = vld [vmem:[%s163_s1 + $0x10] sm:$0xff] }
   0x3   :  { %v26_v7 = vld [vmem:[%s163_s1 + $0x8] sm:$0xff]  ;;  %v25_v8 = vld [vmem:[%s163_s1] sm:$0xff] }
   0x4   :  { %49 = vmatpush.msra.mxu0 %v31_v1  ;;  %88 = vmatpush.msra.mxu1 %v31_v1  ;;  %v23_v9 = vld [vmem:[%s165_s0] sm:$0xff]  ;;  %v24_v10 = vld [vmem:[%s165_s0 + $0x8] sm:$0xff] }
   0x5   :  { %v96_v17 = vld [vmem:[%s164_s2] ss:$0 sm:$0xff] }
   0x6   :  { %50 = vmatpush.msra.mxu0 %v30_v3  ;;  %89 = vmatpush.msra.mxu1 %v30_v3 }
   0x8   :  { %51 = vmatpush.msra.mxu0 %v29_v4  ;;  %90 = vmatpush.msra.mxu1 %v29_v4  ;;  %v21_v11 = vld [vmem:[#allocation2] sm:$0xff] }
   0x9   :  { %v22_v12 = vld [vmem:[#allocation2 + $0x8] sm:$0xff] }
   0xa   :  { %52 = vmatpush.msra.mxu0 %v28_v5  ;;  %91 = vmatpush.msra.mxu1 %v28_v5 }
   0xc   :  { %53 = vmatpush.msra.mxu0 %v27_v6  ;;  %92 = vmatpush.msra.mxu1 %v27_v6 }
   0xe   :  { %54 = vmatpush.msra.mxu0 %v26_v7  ;;  %93 = vmatpush.msra.mxu1 %v26_v7 }
  0x10   :  { %55 = vmatpush.msra.mxu0 %v25_v8  ;;  %94 = vmatpush.msra.mxu1 %v25_v8 }
  0x11   :  { %85 = vmatmul.msk.f32.vlgmr.msra.gmra.mxu0 %vm33_vm1, %v23_v9  ;;  %86 = vmatmul.msk.f32.vlgmr.msra.gmra.mxu1 %vm33_vm1, %v24_v10 }
  0x8e   :  { %v57_v13 = vpop.f32.mrf.mxu0  ;;  %v60_v14 = vpop.f32.mrf.mxu1 }
  0x8f   :  { %v63_v15 = vadd.f32 %v57_v13, %v21_v11  ;;  %v64_v16 = vadd.f32 %v60_v14, %v22_v12 }
  0x91   :  { %66 = vst.msk [vmem:[#allocation2] sm:$0xff] %vm18_vm0, %v63_v15 }
  0x92   :  { %67 = vst.msk [vmem:[#allocation2 + $0x8] sm:$0xff] %vm18_vm0, %v64_v16 }
  0x98   :  { %v71_v18 = vld [vmem:[#allocation2] sm:$0xff] }
  0x99   :  { %v77_v19 = vadd.f32 %v96_v17, %v71_v18  ;;  %v72_v20 = vld [vmem:[#allocation2 + $0x8] sm:$0xff] }
  0x9a   :  { %v78_v21 = vadd.f32 %v96_v17, %v72_v20 }
  0x9b   :  { %79 = vst.msk [vmem:[%s166_s3] sm:$0xff] %vm18_vm0, %v77_v19 }
  0x9c   :  { %80 = vst.msk [vmem:[%s166_s3 + $0x8] sm:$0xff] %vm18_vm0, %v78_v21 }

// kernel: bert_ian_forward.72
= control target key start
LH: loop header
LB: loop body
LE: loop exit
PB: predicated region body
PF: predicated region fallthrough
CT: control target
= control target key end

     0   :  { %vm18_vm0 = vcmask 254976   ;;  %v70_v2 = vmov 0.0   ;;  %vm26_vm1 = vcmask 261120   ;;  %s115_s1 = inlined_call_operand.vmem [shape: f32[32,32], index: 1, kind: input, shape index: {}]   ;;  %s116_s2 = inlined_call_operand.vmem [shape: f32[1,32], index: 2, kind: input, shape index: {}]   ;;  %s117_s0 = inlined_call_operand.vmem [shape: f32[2,32], index: 0, kind: input, shape index: {}]   ;;  %s118_s3 = inlined_call_operand.vmem [shape: f32[2,32], index: 3, kind: output, shape index: {}]  }
   0x1   :  { %v25_v0 = vld [vmem:[%s115_s1 + $0x18] sm:$0xff]  ;;  %v24_v1 = vld [vmem:[%s115_s1 + $0x10] sm:$0xff]  ;;  %19 = vst.msk [vmem:[#allocation2] sm:$0x3] %vm18_vm0, %v70_v2  ;;  %v23_v3 = vld [vmem:[%s115_s1 + $0x8] sm:$0xff] }
   0x2   :  { %42 = vmatpush.msra.mxu0 %v25_v0  ;;  %v22_v4 = vld [vmem:[%s115_s1] sm:$0xff] }
   0x3   :  { %v21_v5 = vld [vmem:[%s117_s0] sm:$0x3] }
   0x4   :  { %43 = vmatpush.msra.mxu0 %v24_v1  ;;  %v69_v9 = vld [vmem:[%s116_s2] ss:$0 sm:$0xff] }
   0x6   :  { %44 = vmatpush.msra.mxu0 %v23_v3 }
   0x8   :  { %45 = vmatpush.msra.mxu0 %v22_v4  ;;  %v20_v6 = vld [vmem:[#allocation2] sm:$0x3] }
   0x9   :  { %67 = vmatmul.msk.f32.vlgmr.msra.gmra.mxu0 %vm26_vm1, %v21_v5 }
  0x86   :  { %v47_v7 = vpop.f32.mrf.mxu0 }
  0x87   :  { %v50_v8 = vadd.f32 %v47_v7, %v20_v6 }
  0x89   :  { %52 = vst.msk [vmem:[#allocation2] sm:$0x3] %vm18_vm0, %v50_v8 }
  0x90   :  { %v56_v10 = vld [vmem:[#allocation2] sm:$0x3] }
  0x91   :  { %v61_v11 = vadd.f32 %v69_v9, %v56_v10 }
  0x93   :  { %62 = vst.msk [vmem:[%s118_s3] sm:$0x3] %vm18_vm0, %v61_v11 }

// kernel: bert_ian_forward.46
= control target key start
LH: loop header
LB: loop body
LE: loop exit
PB: predicated region body
PF: predicated region fallthrough
CT: control target
= control target key end

     0   :  { %vm18_vm0 = vcmask 523264   ;;  %v178_v2 = vmov 0.0   ;;  %vm29_vm1 = vcmask 261120   ;;  %s249_s1 = inlined_call_operand.vmem [shape: f32[32,64], index: 1, kind: input, shape index: {}]   ;;  %s250_s2 = inlined_call_operand.vmem [shape: f32[1,64], index: 2, kind: input, shape index: {}]   ;;  %s251_s0 = inlined_call_operand.vmem [shape: f32[16,32], index: 0, kind: input, shape index: {}]   ;;  %s252_s3 = inlined_call_operand.vmem [shape: f32[16,64], index: 3, kind: output, shape index: {}]  }
   0x1   :  { %v28_v0 = vld [vmem:[%s249_s1 + $0x18] sm:$0xff]  ;;  %v27_v1 = vld [vmem:[%s249_s1 + $0x10] sm:$0xff]  ;;  %19 = vst.msk [vmem:[#allocation2] sm:$0xff] %vm18_vm0, %v178_v2  ;;  %v26_v3 = vld [vmem:[%s249_s1 + $0x8] sm:$0xff] }
   0x2   :  { %48 = vmatpush.msra.mxu0 %v28_v0  ;;  %163 = vmatpush.msra.mxu1 %v28_v0  ;;  %20 = vst.msk [vmem:[#allocation2 + $0x8] sm:$0xff] %vm18_vm0, %v178_v2  ;;  %v25_v4 = vld [vmem:[%s249_s1] sm:$0xff]  ;;  %v24_v6 = vld [vmem:[%s251_s0 + $0x8] sm:$0xff] }
   0x3   :  { %v23_v5 = vld [vmem:[%s251_s0] sm:$0xff] }
   0x4   :  { %49 = vmatpush.msra.mxu0 %v27_v1  ;;  %164 = vmatpush.msra.mxu1 %v27_v1  ;;  %v169_v13 = vld [vmem:[%s250_s2] ss:$0 sm:$0xff] }
   0x6   :  { %50 = vmatpush.msra.mxu0 %v26_v3  ;;  %165 = vmatpush.msra.mxu1 %v26_v3 }
   0x8   :  { %51 = vmatpush.msra.mxu0 %v25_v4  ;;  %166 = vmatpush.msra.mxu1 %v25_v4  ;;  %v21_v7 = vld [vmem:[#allocation2] sm:$0xff] }
   0x9   :  { %161 = vmatmul.msk.f32.vlgmr.msra.gmra.mxu0 %vm29_vm1, %v23_v5  ;;  %162 = vmatmul.msk.f32.vlgmr.msra.gmra.mxu1 %vm29_vm1, %v24_v6  ;;  %v22_v8 = vld [vmem:[#allocation2 + $0x8] sm:$0xff] }
  0x86   :  { %v53_v9 = vpop.f32.mrf.mxu0  ;;  %v56_v10 = vpop.f32.mrf.mxu1 }
  0x87   :  { %v59_v11 = vadd.f32 %v53_v9, %v21_v7  ;;  %v60_v12 = vadd.f32 %v56_v10, %v22_v8 }
  0x89   :  { %62 = vst.msk [vmem:[#allocation2] sm:$0xff] %vm18_vm0, %v59_v11  ;;  %v179_v11 = vmov -1.0  }
  0x8a   :  { %63 = vst.msk [vmem:[#allocation2 + $0x8] sm:$0xff] %vm18_vm0, %v60_v12 }
  0x90   :  { %v67_v14 = vld [vmem:[#allocation2] sm:$0xff] }
  0x91   :  { %v225_v15 = vadd.f32 %v169_v13, %v67_v14  ;;  %v68_v16 = vld [vmem:[#allocation2 + $0x8] sm:$0xff] }
  0x92   :  { %v227_v17 = vadd.f32 %v169_v13, %v68_v16 }
  0x93   :  { %v230_v18 = vmul.f32 0.70710677, %v225_v15 }
  0x94   :  { %v233_v19 = vmul.f32 0.70710677, %v227_v17 }
  0x95   :  { %v83_v20 = vand.u32 2147483647, %v230_v18  ;;  %vm79_vm10 = vcmp.ge.f32.partialorder %v230_v18, 0.0 }
  0x96   :  { %v84_v21 = vand.u32 2147483647, %v233_v19  ;;  %vm80_vm11 = vcmp.ge.f32.partialorder %v233_v19, 0.0  ;;  %v81_v12 = vsel %vm79_vm10, 1.0, %v179_v11 }
  0x97   :  { %v85_v22 = vmul.f32 0.3275911, %v83_v20  ;;  %v137_v44 = vsub.f32 0.0, %v83_v20  ;;  %v82_v16 = vsel %vm80_vm11, 1.0, %v179_v11 }
  0x98   :  { %v86_v23 = vmul.f32 0.3275911, %v84_v21  ;;  %v138_v48 = vsub.f32 0.0, %v84_v21 }
  0x99   :  { %v87_v24 = vadd.f32 1.0, %v85_v22  ;;  %v139_v51 = vmul.f32 %v137_v44, %v83_v20 }
  0x9a   :  { %v88_v25 = vadd.f32 1.0, %v86_v23  ;;  %v140_v54 = vmul.f32 %v138_v48, %v84_v21  ;;  %v75_v21 = vmul.f32 0.5, %v225_v15  ;;  %v76_v23 = vmul.f32 0.5, %v227_v17 }
  0x9b   :  { %170 = vrcp.f32 %v87_v24  ;;  %v100_v31 = vand.u32 2147483648, %v87_v24  ;;  %v98_v34 = vand.u32 2147483647, %v87_v24  ;;  %vm94_vm4 = vweird.f32 %v87_v24 }
  0x9c   :  { %172 = vrcp.f32 %v88_v25  ;;  %v115_v35 = vand.u32 2147483648, %v88_v25  ;;  %v113_v37 = vand.u32 2147483647, %v88_v25  ;;  %vm109_vm6 = vweird.f32 %v88_v25 }
  0x9d   :  { %v101_v39 = vor.u32 1.1754944e-38, %v100_v31  ;;  %vm99_vm7 = vcmp.eq.f32.partialorder %v98_v34, 8.507059e+37  ;;  %v141_v57 = vmul.f32 1.442695, %v139_v51  ;;  %v143_v60 = vmul.f32 1.442695, %v140_v54 }
  0x9e   :  { %v116_v42 = vor.u32 1.1754944e-38, %v115_v35  ;;  %vm114_vm9 = vcmp.eq.f32.partialorder %v113_v37, 8.507059e+37 }
  0x9f   :  { %174 = vpow2.f32 %v141_v57 }
  0xa0   :  { %176 = vpow2.f32 %v143_v60 }
  0xa1   :  { %v171_v26 = vpop.eup %170 }
  0xa2   :  { %v173_v27 = vpop.eup %172  ;;  %v90_v28 = vmul.f32 %v171_v26, %v87_v24  ;;  %vm95_vm2 = vweird.f32 %v171_v26 }
  0xa3   :  { %v105_v29 = vmul.f32 %v173_v27, %v88_v25  ;;  %vm110_vm3 = vweird.f32 %v173_v27  ;;  %vm96_vm5 = vmor %vm94_vm4, %vm95_vm2 }
  0xa4   :  { %v91_v30 = vsub.f32 1.0, %v90_v28  ;;  %vm111_vm8 = vmor %vm109_vm6, %vm110_vm3 }
  0xa5   :  { %v106_v32 = vsub.f32 1.0, %v105_v29  ;;  %v175_v5 = vpop.eup %174 }
  0xa6   :  { %v92_v33 = vmul.f32 %v171_v26, %v91_v30  ;;  %v177_v7 = vpop.eup %176 }
  0xa7   :  { %v107_v36 = vmul.f32 %v173_v27, %v106_v32 }
  0xa8   :  { %v93_v38 = vadd.f32 %v171_v26, %v92_v33 }
  0xa9   :  { %v108_v40 = vadd.f32 %v173_v27, %v107_v36 }
  0xaa   :  { %v97_v41 = vsel %vm96_vm5, %v171_v26, %v93_v38 }
  0xab   :  { %v102_v43 = vsel %vm99_vm7, %v101_v39, %v97_v41  ;;  %v112_v45 = vsel %vm111_vm8, %v173_v27, %v108_v40 }
  0xac   :  { %v119_v46 = vmul.f32 1.0614054, %v102_v43  ;;  %v117_v47 = vsel %vm114_vm9, %v116_v42, %v112_v45 }
  0xad   :  { %v120_v49 = vmul.f32 1.0614054, %v117_v47 }
  0xae   :  { %v121_v50 = vadd.f32 -1.4531521, %v119_v46 }
  0xaf   :  { %v122_v52 = vadd.f32 -1.4531521, %v120_v49 }
  0xb0   :  { %v123_v53 = vmul.f32 %v121_v50, %v102_v43 }
  0xb1   :  { %v124_v55 = vmul.f32 %v122_v52, %v117_v47 }
  0xb2   :  { %v125_v56 = vadd.f32 1.4214138, %v123_v53 }
  0xb3   :  { %v126_v58 = vadd.f32 1.4214138, %v124_v55 }
  0xb4   :  { %v127_v59 = vmul.f32 %v125_v56, %v102_v43 }
  0xb5   :  { %v128_v61 = vmul.f32 %v126_v58, %v117_v47 }
  0xb6   :  { %v129_v62 = vadd.f32 -0.28449672, %v127_v59 }
  0xb7   :  { %v130_v63 = vadd.f32 -0.28449672, %v128_v61 }
  0xb8   :  { %v131_v0 = vmul.f32 %v129_v62, %v102_v43 }
  0xb9   :  { %v132_v1 = vmul.f32 %v130_v63, %v117_v47 }
  0xba   :  { %v133_v2 = vadd.f32 0.2548296, %v131_v0 }
  0xbb   :  { %v134_v3 = vadd.f32 0.2548296, %v132_v1 }
  0xbc   :  { %v135_v4 = vmul.f32 %v133_v2, %v102_v43 }
  0xbd   :  { %v136_v6 = vmul.f32 %v134_v3, %v117_v47 }
  0xbe   :  { %v145_v8 = vmul.f32 %v175_v5, %v135_v4 }
  0xbf   :  { %v146_v9 = vmul.f32 %v177_v7, %v136_v6 }
  0xc0   :  { %v147_v10 = vsub.f32 1.0, %v145_v8 }
  0xc1   :  { %v148_v13 = vsub.f32 1.0, %v146_v9 }
  0xc2   :  { %v149_v14 = vmul.f32 %v147_v10, %v81_v12 }
  0xc3   :  { %v150_v20 = vmul.f32 %v148_v13, %v82_v16 }
  0xc4   :  { %v151_v22 = vadd.f32 1.0, %v149_v14 }
  0xc5   :  { %v152_v24 = vadd.f32 1.0, %v150_v20 }
  0xc6   :  { %v153_v25 = vmul.f32 %v151_v22, %v75_v21 }
  0xc7   :  { %v154_v26 = vmul.f32 %v152_v24, %v76_v23 }
  0xc8   :  { %155 = vst.msk [vmem:[%s252_s3] sm:$0xff] %vm18_vm0, %v153_v25 }
  0xc9   :  { %156 = vst.msk [vmem:[%s252_s3 + $0x8] sm:$0xff] %vm18_vm0, %v154_v26 }

// kernel: bert_ian_forward.79
= control target key start
LH: loop header
LB: loop body
LE: loop exit
PB: predicated region body
PF: predicated region fallthrough
CT: control target
= control target key end

     0   :  { %s320_s9 = smov 0   ;;  %s345_s0 = inlined_call_operand.vmem [shape: f32[2,8,32], index: 0, kind: input, shape index: {}]   ;;  %s346_s1 = inlined_call_operand.vmem [shape: f32[2,1,32], index: 1, kind: input, shape index: {}]   ;;  %s347_s2 = inlined_call_operand.vmem [shape: f32[2,1,32], index: 2, kind: output, shape index: {}]  }
   0x1 LB: > { %s274_s10 = sadd.s32 4294967295, %s303_s9   ;;  %p278_p0 = scmp.ge.s32.totalorder %s303_s9, 1  ;;  %s303_s9 = sphi %s320_s9, %s12_s9  }
   0x2   : > { %p119_p1 = scmp.lt.s32.totalorder %s303_s9, 3 }
   0x4   : > { %p120_p2 = pnand %p278_p0, %p119_p1 }
   0x5   : > { %p141_p3 = scmp.lt.s32.totalorder (!%p120_p2), %s274_s10, 1 }
   0x6   : > { %123 = sbr.rel (%p120_p2) target bundleno = 525 (0x20d), region = 28 }
   0xb   : > { %s349_s10 = smov (!%p141_p3, %s274_s10), 1  ;;  %vm153_vm0 = vcmask 261120   ;;  %vm180_vm1 = vcmask 57344   ;;  %vm192_vm2 = vcmask 64512   ;;  %vm216_vm3 = vcmask 253952  }
   0xc   : > { %s279_s11 = sshll.u32 %s349_s10, 3  ;;  %s147_s14 = scalar_lea.vmem %s346_s1, %s349_s10 }
   0xd   : > { %s144_s17 = scalar_lea.vmem %s345_s0, %s279_s11  ;;  %v152_v1 = vld [vmem:[%s147_s14] sm:$0x1]  ;;  %s150_s20 = scalar_lea.vmem %s347_s2, %s349_s10 }
   0xe   : > { %v151_v0 = vld [vmem:[%s144_s17] sm:$0xff] }
   0xf   : > { %280 = vmatpush.xpose.msk.msra.mxu0 %vm153_vm0, %v151_v0  ;;  %211 = vmatpush.msra.mxu1 %v151_v0 }
  0x12   : > { %281 = vmatmul.msk.f32.vlgmr.msra.gmra.mxu0 %vm153_vm0, %v152_v1 }
  0x8f   : > { %v177_v2 = vpop.f32.mrf.mxu0 }
  0x90   : > { %v181_v3 = vsel %vm180_vm1, %v177_v2, -inf }
  0x91   : > { %182 = vmax.xlane.f32.xlu0 %v181_v3 }
 0x104   : > { %v183_v4 = vpop.xlane.xlu0 %182 }
 0x105   : > { %v184_v5 = vsub.f32 %v177_v2, %v183_v4 }
 0x107   : > { %v185_v6 = vmul.f32 1.442695, %v184_v5 }
 0x109   : > { %293 = vpow2.f32 %v185_v6 }
 0x10f   : > { %v294_v7 = vpop.eup %293 }
 0x110   : > { %v187_v8 = vsel %vm180_vm1, %v294_v7, 0.0 }
 0x111   : > { %188 = vadd.xlane.f32.xlu0 %v187_v8 }
 0x184   : > { %v189_v9 = vpop.xlane.xlu0 %188 }
 0x185   : > { %295 = vrcp.f32 %v189_v9 }
 0x18b   : > { %v296_v10 = vpop.eup %295 }
 0x18c   : > { %v191_v11 = vmul.f32 %v296_v10, %v294_v7 }
 0x18e   : > { %282 = vmatmul.msk.f32.vlgmr.msra.gmra.mxu1 %vm192_vm2, %v191_v11 }
 0x20b   : > { %v213_v12 = vpop.f32.mrf.mxu1 }
 0x20c   : > { %217 = vst.msk [vmem:[%s150_s20] sm:$0x1] %vm216_vm3, %v213_v12 }
 0x20d PF: > { %s12_s9 = sadd.s32 1, %s303_s9  }
 0x20e   : > { %p9_p4 = scmp.ge.s32.totalorder %s12_s9, 4  }
 0x210   :  { %11 = sbr.rel (!%p9_p4) target bundleno = 1 (0x1), region = 61 }

// kernel: bert_ian_forward.81
= control target key start
LH: loop header
LB: loop body
LE: loop exit
PB: predicated region body
PF: predicated region fallthrough
CT: control target
= control target key end

     0   :  { %vm19_vm0 = vcmask 17408   ;;  %v114_v2 = vmov 0.0   ;;  %s172_s0 = inlined_call_operand.vmem [shape: f32[2,64], index: 0, kind: input, shape index: {}]   ;;  %s173_s1 = inlined_call_operand.vmem [shape: f32[64,3], index: 1, kind: input, shape index: {}]   ;;  %s174_s2 = inlined_call_operand.vmem [shape: f32[1,3], index: 2, kind: input, shape index: {}]   ;;  %s175_s3 = inlined_call_operand.hbm [shape: f32[2,3], index: 3, kind: output, shape index: {}]  }
   0x1   :  { %v30_v0 = vld [vmem:[%s173_s1 + $0x38] sm:$0xff]  ;;  %v29_v1 = vld [vmem:[%s173_s1 + $0x30] sm:$0xff]  ;;  %20 = vst.msk [vmem:[#allocation2] sm:$0x3] %vm19_vm0, %v114_v2  ;;  %v28_v3 = vld [vmem:[%s173_s1 + $0x28] sm:$0xff] }
   0x2   :  { %43 = vmatpush.msra.mxu0 %v30_v0 }
   0x4   :  { %44 = vmatpush.msra.mxu0 %v29_v1 }
   0x5   :  { %8 = vsyncpa [#allocation4], 0  ;;  %v27_v4 = vld [vmem:[%s173_s1 + $0x20] sm:$0xff]  ;;  %v26_v5 = vld [vmem:[%s173_s1 + $0x18] sm:$0xff]  ;;  %vm31_vm1 = vcmask 523264   ;;  %s115_s5 = smov [#allocation3]  }
   0x6   :  { %45 = vmatpush.msra.mxu0 %v28_v3  ;;  %v25_v6 = vld [vmem:[%s173_s1 + $0x10] sm:$0xff]  ;;  %v24_v7 = vld [vmem:[%s173_s1 + $0x8] sm:$0xff]  ;;  %v23_v8 = vld [vmem:[%s173_s1] sm:$0xff]  ;;  %s73_s6 = sshll.u32 %s115_s5, 4  ;;  %s75_s8 = sshll.u32 %s175_s3, 4  ;;  %s74_s6 = int_to_ptr.vmem [resolvable:$true] %s73_s6  ;;  %s76_s8 = int_to_ptr.hbm [resolvable:$true] %s75_s8 }
   0x7   :  { %v22_v9 = vld [vmem:[%s172_s0] sm:$0x3] }
   0x8   :  { %46 = vmatpush.msra.mxu0 %v27_v4  ;;  %v21_v10 = vld [vmem:[#allocation2] sm:$0x3] }
   0x9   :  { %v87_v13 = vld [vmem:[%s174_s2] ss:$0 sm:$0xff] }
   0xa   :  { %47 = vmatpush.msra.mxu0 %v26_v5 }
   0xc   :  { %48 = vmatpush.msra.mxu0 %v25_v6 }
   0xe   :  { %49 = vmatpush.msra.mxu0 %v24_v7 }
  0x10   :  { %50 = vmatpush.msra.mxu0 %v23_v8 }
  0x11   :  { %84 = vmatmul.msk.f32.vlgmr.msra.gmra.mxu0 %vm31_vm1, %v22_v9 }
  0x8e   :  { %v52_v11 = vpop.f32.mrf.mxu0 }
  0x8f   :  { %v55_v12 = vadd.f32 %v52_v11, %v21_v10 }
  0x91   :  { %57 = vst.msk [vmem:[#allocation2] sm:$0x3] %vm19_vm0, %v55_v12 }
  0x98   :  { %v61_v14 = vld [vmem:[#allocation2] sm:$0x3] }
  0x99   :  { %v66_v15 = vadd.f32 %v87_v13, %v61_v14 }
  0x9b   :  { %67 = vst.msk [vmem:[#allocation3] sm:$0x3] %vm19_vm0, %v66_v15 }
  0x9c   :  { %78 = dma.vmem_to_hbm [thread:$0]  %s74_s6, 32, %s76_s8, [#allocation4]  }
  0x9d   :  { %112 = dma.done.wait [#allocation4], 32  }
  0x9e   :  { %113 = vsyncadd [#allocation4], 4294967264 }
  0x9f   :  { %83 = vsyncpa [#allocation4], 1 }

</bundles_post_ra>
